<compile_context>
chip_gen: v5e
topology: v5e:2x2
jax: 0.10.0
libtpu: 0.0.40
codegen_flags: <defaults>
</compile_context>

<pallas_src>
import functools

import jax
import jax.numpy as jnp
from jax.experimental import pallas as pl
from jax.experimental.pallas import tpu as pltpu


# ----------------------------------------------------------------------------- kernels

def _attention_rowtile_kernel(q_ref, v_ref, ctx_ref, attn_ref, *, tr, use_bf16):
    """Fast path (requires L == S): one row tile of attn/context per grid step.

    q_ref: (L, H) full query (resident: constant index_map, DMA'd once).
    v_ref: (S, H) full value (resident, single copy); this step's row tile is
           sliced from it in VMEM — no second HBM stream for V.
    """
    row0 = pl.multiple_of(pl.program_id(0) * tr, tr)
    v_rows = v_ref[pl.ds(row0, tr), :]        # (TR, H)
    q = q_ref[...]                            # (L, H)
    v_full = v_ref[...]                       # (S, H)

    if use_bf16:
        lhs, rhs = v_rows.astype(jnp.bfloat16), q.astype(jnp.bfloat16)
    else:
        lhs, rhs = v_rows, q

    # score[r, j] = <v_{row0+r}, q_j> -> (TR, L); with L == S this is directly the
    # row block of PyTorch's score.view(-1, input_size) — no reshape/relayout.
    score = jax.lax.dot_general(
        lhs, rhs,
        dimension_numbers=(((1,), (1,)), ((), ())),
        preferred_element_type=jnp.float32,
    )

    # Numerically-stable softmax over dim 1; normalization deferred past the MXU.
    m = jnp.max(score, axis=1, keepdims=True)
    e = jnp.exp(score - m)
    denom = jnp.sum(e, axis=1, keepdims=True)
    inv = pl.reciprocal(denom, approx=True)   # EUP slot
    inv = inv * (2.0 - denom * inv)           # one Newton step -> full f32 accuracy

    attn_ref[...] = (e * inv).astype(attn_ref.dtype)

    # context = attn @ V == (e @ V) * inv: the vmatmul no longer waits on the
    # reciprocal or the (TR,S) normalization multiply; scale is a tiny (TR,H) post-mul.
    e_mm = e.astype(jnp.bfloat16) if use_bf16 else e
    v_mm = v_full.astype(jnp.bfloat16) if use_bf16 else v_full
    ctx = jnp.dot(e_mm, v_mm, preferred_element_type=jnp.float32) * inv
    ctx_ref[...] = ctx.astype(ctx_ref.dtype)


def _attention_fallback_kernel(q_ref, v_ref, ctx_ref, attn_ref, *, use_bf16):
    """General path (handles L != S): single block, with the row-major .view reshape."""
    q = q_ref[...]            # (L, H)
    v = v_ref[...]            # (S, H)
    s_dim = v.shape[0]

    lhs = v.astype(jnp.bfloat16) if use_bf16 else v
    rhs = q.astype(jnp.bfloat16) if use_bf16 else q
    score = jax.lax.dot_general(           # (S, L): score[s, l] = <v_s, q_l>
        lhs, rhs,
        dimension_numbers=(((1,), (1,)), ((), ())),
        preferred_element_type=jnp.float32,
    )
    # torch .view(-1, input_size) on the contiguous (S, L, 1) result == row-major reshape.
    score2d = score.reshape(-1, s_dim)     # (L, S)

    m = jnp.max(score2d, axis=1, keepdims=True)
    e = jnp.exp(score2d - m)
    denom = jnp.sum(e, axis=1, keepdims=True)
    inv = pl.reciprocal(denom, approx=True)
    inv = inv * (2.0 - denom * inv)

    attn_ref[...] = (e * inv).astype(attn_ref.dtype)

    e_mm = e.astype(jnp.bfloat16) if use_bf16 else e
    v_mm = v.astype(jnp.bfloat16) if use_bf16 else v
    ctx = jnp.dot(e_mm, v_mm, preferred_element_type=jnp.float32) * inv
    ctx_ref[...] = ctx.astype(ctx_ref.dtype)


# ----------------------------------------------------------------------------- tiling

def _vmem_capacity_bytes():
    try:
        return int(pltpu.get_tpu_info().vmem_capacity_bytes)
    except Exception:
        return 64 * 1024 * 1024      # conservative default (v7x per-TensorCore VMEM)


def _pick_row_tile(n_rows, s_dim, h_dim, budget_bytes):
    """Largest multiple-of-8 row tile that (a) divides n_rows, (b) fits the VMEM
    budget (resident Q/V + ~6 live (TR,S) f32 temporaries + double-buffered output
    tiles), preferring tiles that give >= 4 grid steps so writeback pipelines
    (>= 2 steps per TensorCore on v7x megacore). Returns None if nothing fits."""
    cands = [t for t in (512, 256, 128, 64, 32, 16, 8)
             if t <= n_rows and n_rows % t == 0 and (t <= 256 or n_rows >= 2048)]

    def fits(t):
        resident = 4 * h_dim * (n_rows + s_dim)       # resident Q + V (f32)
        live = 6 * 4 * t * s_dim                      # score / e / attn temporaries
        out_dbuf = 2 * 4 * t * (s_dim + h_dim)        # double-buffered output tiles
        return resident + live + out_dbuf <= budget_bytes

    fitting = [t for t in cands if fits(t)]
    if not fitting:
        # TODO(synk): online-softmax variant streaming V in S-tiles for huge S.
        return None
    pipelined = [t for t in fitting if n_rows // t >= 4]
    return pipelined[0] if pipelined else fitting[0]


# ----------------------------------------------------------------------------- wrapper

def dot_product_attention(query, value, *, use_bf16_matmul=False, attn_dtype=None):
    """query: (1, L, H); value: (S, 1, H) -> (context (L, H), attn (L, S)).

    use_bf16_matmul: opt-in — run both MXU matmuls with bf16 operands (f32
      accumulation); ~2-4x MXU throughput, looser numerics.
    attn_dtype: opt-in override for the attn output dtype (e.g. jnp.bfloat16) to
      halve the dominant (L, S) HBM writeback. Default: query.dtype.
    """
    b, l_dim, h_dim = query.shape
    s_dim, v_b, v_h = value.shape
    assert b == 1 and v_b == 1 and v_h == h_dim

    q2d = query[0]            # (L, H)
    v2d = value[:, 0, :]      # (S, H)  == value.squeeze(1)
    n_rows = (s_dim * l_dim) // s_dim      # rows of attn after .view(-1, input_size) == L

    out_dtype = query.dtype
    attn_dt = jax.ShapeDtypeStruct((), attn_dtype if attn_dtype is not None
                                   else query.dtype).dtype

    vmem_cap = _vmem_capacity_bytes()
    vmem_limit = min(vmem_cap // 2, 48 * 1024 * 1024)   # <=32 MiB on v7x, 48 MiB on v5e/v6e
    budget = int(vmem_limit * 0.85)

    cost = pl.CostEstimate(
        flops=4 * l_dim * s_dim * h_dim,                 # two matmuls
        transcendentals=l_dim * s_dim,                   # exp
        bytes_accessed=(query.dtype.itemsize * (2 * l_dim * h_dim + s_dim * h_dim)
                        + attn_dt.itemsize * l_dim * s_dim),
    )
    cparams = dict(vmem_limit_bytes=vmem_limit)

    tr = _pick_row_tile(n_rows, s_dim, h_dim, budget) if l_dim == s_dim else None

    if tr is not None:
        # Fast path: tiled + pipelined, single resident copy of V, "parallel" row axis.
        kernel = functools.partial(_attention_rowtile_kernel, tr=tr,
                                   use_bf16=use_bf16_matmul)
        ctx, attn = pl.pallas_call(
            kernel,
            out_shape=(
                jax.ShapeDtypeStruct((n_rows, h_dim), out_dtype),
                jax.ShapeDtypeStruct((n_rows, s_dim), attn_dt),
            ),
            grid=(n_rows // tr,),
            in_specs=[
                pl.BlockSpec((l_dim, h_dim), lambda i: (0, 0)),   # resident Q
                pl.BlockSpec((s_dim, h_dim), lambda i: (0, 0)),   # resident V (only copy)
            ],
            out_specs=(
                pl.BlockSpec((tr, h_dim), lambda i: (i, 0)),      # context tile
                pl.BlockSpec((tr, s_dim), lambda i: (i, 0)),      # attn tile (lane-dense if S%128==0)
            ),
            compiler_params=pltpu.CompilerParams(
                dimension_semantics=("parallel",), **cparams),
            cost_estimate=cost,
        )(q2d, v2d)
        return ctx, attn

    # General fallback (L != S or no fitting tile): single block, full fidelity.
    fallback_bytes = 4 * (2 * l_dim * h_dim + s_dim * h_dim + 5 * l_dim * s_dim)
    if fallback_bytes > budget:
        # TODO(synk): tiled / online-softmax variant for huge L != S problems.
        raise ValueError(
            f"Fallback attention block (~{fallback_bytes / 2**20:.1f} MiB) exceeds the "
            f"VMEM budget (~{budget / 2**20:.1f} MiB) on this TPU generation.")

    kernel = functools.partial(_attention_fallback_kernel, use_bf16=use_bf16_matmul)
    ctx, attn = pl.pallas_call(
        kernel,
        out_shape=(
            jax.ShapeDtypeStruct((n_rows, h_dim), out_dtype),
            jax.ShapeDtypeStruct((n_rows, s_dim), attn_dt),
        ),
        grid=(1,),
        in_specs=[
            pl.BlockSpec((l_dim, h_dim), lambda i: (0, 0)),
            pl.BlockSpec((s_dim, h_dim), lambda i: (0, 0)),
        ],
        out_specs=(
            pl.BlockSpec((n_rows, h_dim), lambda i: (0, 0)),
            pl.BlockSpec((n_rows, s_dim), lambda i: (0, 0)),
        ),
        compiler_params=pltpu.CompilerParams(
            dimension_semantics=("arbitrary",), **cparams),
        cost_estimate=cost,
    )(q2d, v2d)
    return ctx, attn


# ----------------------------------------------------------------------------- params

def init_params(hidden_dim, key):
    """Parameters created by __init__ (LayerNorm + Linear). The PyTorch forward()
    never applies them, so they are intentionally unused — kept only for fidelity."""
    k_w, k_b = jax.random.split(key)
    bound = 1.0 / jnp.sqrt(jnp.float32(2 * hidden_dim))
    return {
        "normalize": {
            "weight": jnp.ones((hidden_dim,), jnp.float32),
            "bias": jnp.zeros((hidden_dim,), jnp.float32),
        },
        "out_projection": {
            "weight": jax.random.uniform(
                k_w, (hidden_dim, 2 * hidden_dim), jnp.float32, -bound, bound),
            "bias": jax.random.uniform(
                k_b, (hidden_dim,), jnp.float32, -bound, bound),
        },
    }


# ----------------------------------------------------------------------------- reference

def _reference(query, value):
    """Pure-JAX transcription of the PyTorch forward (correctness oracle)."""
    input_size = value.shape[0]
    score = jnp.matmul(query, jnp.swapaxes(value, 1, 2))        # (S, L, 1) via broadcast
    attn = jax.nn.softmax(score.reshape(-1, input_size), axis=1)
    context = attn @ value[:, 0, :]                              # value.squeeze(1)
    return context, attn


def _check(query, value, atol=1e-4, rtol=1e-4, **kwargs):
    ctx, attn = dot_product_attention(query, value, **kwargs)
    ctx = jax.block_until_ready(ctx)
    attn = jax.block_until_ready(attn)
    ctx_ref, attn_ref = _reference(query, value)
    assert ctx.shape == ctx_ref.shape and attn.shape == attn_ref.shape
    assert jnp.allclose(ctx, ctx_ref, atol=atol, rtol=rtol)
    assert jnp.allclose(attn, attn_ref, atol=atol, rtol=rtol)


if __name__ == "__main__":
    key = jax.random.PRNGKey(0)
    k1, k2, k3, k4, k5, k6, k_p = jax.random.split(key, 7)

    # 1) Main case: tiled fast path (L == S == 512, H == 128) -> TR=128, grid=(4,),
    #    lane-dense attn output (S % 128 == 0), single resident copy of V.
    q_big = jax.random.normal(k1, (1, 512, 128), jnp.float32)
    v_big = jax.random.normal(k2, (512, 1, 128), jnp.float32)
    _check(q_big, v_big)

    # 2) Tiny case consistent with the module's demo shapes (L == S == 8, H == 32).
    q_small = jax.random.normal(k3, (1, 8, 32), jnp.float32)
    v_small = jax.random.normal(k4, (8, 1, 32), jnp.float32)
    _check(q_small, v_small)

    # 3) L != S case: exercises the general fallback kernel (full PyTorch .view semantics).
    q_rect = jax.random.normal(k5, (1, 16, 32), jnp.float32)
    v_rect = jax.random.normal(k6, (8, 1, 32), jnp.float32)
    _check(q_rect, v_rect)

    # 4) Opt-in bf16-operand MXU path: compile/run + sanity checks (looser numerics by design).
    ctx_bf, attn_bf = dot_product_attention(q_big, v_big, use_bf16_matmul=True)
    ctx_bf = jax.block_until_ready(ctx_bf)
    attn_bf = jax.block_until_ready(attn_bf)
    assert ctx_bf.shape == (512, 128) and attn_bf.shape == (512, 512)
    assert bool(jnp.isfinite(ctx_bf).all()) and bool(jnp.isfinite(attn_bf).all())

    params = init_params(128, k_p)  # created per __init__, unused in forward

    print("KERNEL_OK")
</pallas_src>

<mosaic_0001>
module attributes {stable_mosaic.version = 11 : i64} {
  func.func @_attention_rowtile_kernel(%arg0: i32, %arg1: memref<512x128xf32, #tpu.memory_space<vmem>>, %arg2: memref<512x128xf32, #tpu.memory_space<vmem>>, %arg3: memref<128x128xf32, #tpu.memory_space<vmem>>, %arg4: memref<128x512xf32, #tpu.memory_space<vmem>>) attributes {dimension_semantics = [#tpu.dimension_semantics<parallel>], iteration_bounds = array<i64: 4>, scalar_prefetch = 0 : i64, scratch_operands = 0 : i64, tpu.core_type = #tpu.core_type<tc>, window_params = [{pipeline_mode = #tpu.pipeline_mode<synchronous>, transform_indices = @transform_0, window_bounds = array<i64: 512, 128>}, {pipeline_mode = #tpu.pipeline_mode<synchronous>, transform_indices = @transform_1, window_bounds = array<i64: 512, 128>}, {transform_indices = @transform_2, window_bounds = array<i64: 128, 128>}, {transform_indices = @transform_3, window_bounds = array<i64: 128, 512>}]} {
    %c128_i32 = arith.constant 128 : i32
    %0 = arith.muli %arg0, %c128_i32 : i32
    %1 = tpu.assume_multiple %0, 128 : i32
    %2 = arith.index_cast %1 : i32 to index
    %c0 = arith.constant 0 : index
    %3 = vector.load %arg2[%2, %c0] : memref<512x128xf32, #tpu.memory_space<vmem>>, vector<128x128xf32>
    %c0_0 = arith.constant 0 : index
    %c0_1 = arith.constant 0 : index
    %4 = vector.load %arg1[%c0_0, %c0_1] : memref<512x128xf32, #tpu.memory_space<vmem>>, vector<512x128xf32>
    %c0_2 = arith.constant 0 : index
    %c0_3 = arith.constant 0 : index
    %5 = vector.load %arg2[%c0_2, %c0_3] : memref<512x128xf32, #tpu.memory_space<vmem>>, vector<512x128xf32>
    %cst = arith.constant dense<0.000000e+00> : vector<128x512xf32>
    %6 = tpu.matmul %3, %4, %cst {dimension_numbers = #tpu.dot_dimension_numbers<[1], [1], [0], [0], [0, 0, 1, 0], [], []>} : vector<128x128xf32>, vector<512x128xf32>, vector<128x512xf32> -> vector<128x512xf32>
    %cst_4 = arith.constant dense<0xFF800000> : vector<128xf32>
    %7 = vector.multi_reduction <maximumf>, %6, %cst_4 [1] : vector<128x512xf32> to vector<128xf32>
    %8 = vector.shape_cast %7 : vector<128xf32> to vector<128x1xf32>
    %9 = vector.broadcast %8 : vector<128x1xf32> to vector<128x512xf32>
    %10 = arith.subf %6, %9 : vector<128x512xf32>
    %11 = math.exp %10 : vector<128x512xf32>
    %cst_5 = arith.constant dense<0.000000e+00> : vector<128xf32>
    %12 = vector.multi_reduction <add>, %11, %cst_5 [1] : vector<128x512xf32> to vector<128xf32>
    %13 = vector.shape_cast %12 : vector<128xf32> to vector<128x1xf32>
    %14 = tpu.reciprocal %13 {approx = true} : vector<128x1xf32> -> vector<128x1xf32>
    %15 = arith.mulf %13, %14 : vector<128x1xf32>
    %cst_6 = arith.constant 2.000000e+00 : f32
    %16 = vector.broadcast %cst_6 : f32 to vector<128x1xf32>
    %17 = arith.subf %16, %15 : vector<128x1xf32>
    %18 = arith.mulf %14, %17 : vector<128x1xf32>
    %19 = vector.broadcast %18 : vector<128x1xf32> to vector<128x512xf32>
    %20 = arith.mulf %11, %19 : vector<128x512xf32>
    %c0_7 = arith.constant 0 : index
    %c0_8 = arith.constant 0 : index
    %21 = vector.load %arg4[%c0_7, %c0_8] : memref<128x512xf32, #tpu.memory_space<vmem>>, vector<128x512xf32>
    tpu.vector_store %arg4[%c0_7, %c0_8], %20 {strides = array<i32>} : memref<128x512xf32, #tpu.memory_space<vmem>>, vector<128x512xf32>,
    %cst_9 = arith.constant dense<0.000000e+00> : vector<128x128xf32>
    %22 = tpu.matmul %11, %5, %cst_9 {dimension_numbers = #tpu.dot_dimension_numbers<[1], [0], [0], [1], [0, 0, 1, 1], [], []>} : vector<128x512xf32>, vector<512x128xf32>, vector<128x128xf32> -> vector<128x128xf32>
    %23 = vector.broadcast %18 : vector<128x1xf32> to vector<128x128xf32>
    %24 = arith.mulf %22, %23 : vector<128x128xf32>
    %c0_10 = arith.constant 0 : index
    %c0_11 = arith.constant 0 : index
    %25 = vector.load %arg3[%c0_10, %c0_11] : memref<128x128xf32, #tpu.memory_space<vmem>>, vector<128x128xf32>
    tpu.vector_store %arg3[%c0_10, %c0_11], %24 {strides = array<i32>} : memref<128x128xf32, #tpu.memory_space<vmem>>, vector<128x128xf32>,
    return
  }
  func.func @transform_0(%arg0: i32) -> (i32, i32) {
    %c0_i32 = arith.constant 0 : i32
    %c0_i32_0 = arith.constant 0 : i32
    %c0_i32_1 = arith.constant 0 : i32
    return %c0_i32, %c0_i32_0 : i32, i32
  }
  func.func @transform_1(%arg0: i32) -> (i32, i32) {
    %c0_i32 = arith.constant 0 : i32
    %c0_i32_0 = arith.constant 0 : i32
    %c0_i32_1 = arith.constant 0 : i32
    return %c0_i32, %c0_i32_0 : i32, i32
  }
  func.func @transform_2(%arg0: i32) -> (i32, i32) {
    %c0_i32 = arith.constant 0 : i32
    %c0_i32_0 = arith.constant 0 : i32
    return %arg0, %c0_i32 : i32, i32
  }
  func.func @transform_3(%arg0: i32) -> (i32, i32) {
    %c0_i32 = arith.constant 0 : i32
    %c0_i32_0 = arith.constant 0 : i32
    return %arg0, %c0_i32 : i32, i32
  }
}

</mosaic_0001>

<bundles_post_ra>
// kernel: tpu_custom_call.1
= control target key start
LH: loop header
LB: loop body
LE: loop exit
PB: predicated region body
PF: predicated region fallthrough
CT: control target
= control target key end

     0   :  { %9 = vsyncpa [#allocation3], 0  ;;  %s2849_s0 = inlined_call_operand.hbm [shape: f32[512,128], index: 0, kind: input, shape index: {}]   ;;  %s2850_s1 = inlined_call_operand.hbm [shape: f32[512,128], index: 1, kind: input, shape index: {}]   ;;  %s2851_s2 = inlined_call_operand.hbm [shape: f32[512,128], index: 2, kind: output, shape index: {0}]   ;;  %s2852_s3 = inlined_call_operand.hbm [shape: f32[512,512], index: 3, kind: output, shape index: {1}]  }
   0x1   :  { %10 = vsyncpa [#allocation6], 0 }
   0x2   :  { %11 = vsyncpa [#allocation4], 0 }
   0x3   :  { %13 = vsyncpa [#allocation4 + $0x1], 0 }
   0x4   :  { %14 = vsyncpa [#allocation9], 0 }
   0x5   :  { %16 = vsyncpa [#allocation9 + $0x1], 0  ;;  %s2029_s12 = smov 0   ;;  %s2031_s13 = smov 0  }
   0x6   :  { %s2033_s14 = smov 0   ;;  %s2035_s15 = smov 0  }
   0x7 LB: > { %s2050_s16 = sadd.s32 4294967295, %s1999_s15   ;;  %s1584_s17 = sadd.s32 4294967294, %s1999_s15   ;;  %s1999_s15 = sphi %s2035_s15, %s2949_s15   ;;  %s1995_s14 = sphi %s2033_s14, %s2948_s14   ;;  %s1991_s13 = sphi %s2031_s13, %s2947_s13   ;;  %s1987_s12 = sphi %s2029_s12, %s2946_s12  }
   0x8   : > { %s2054_s18 = sadd.s32 1, %s1999_s15   ;;  %s71_s19 = sadd.s32 1, %s1995_s14 }
   0x9   : > { %s68_s20 = ssub.s32 %s1999_s15, %s2054_s18  ;;  %p81_p0 = scmp.ne.s32.totalorder %s1995_s14, %s1991_s13 }
   0xa   : > { %p69_p1 = scmp.eq.s32.totalorder %s68_s20, 0  ;;  %p82_p2 = scmp.eq.s32.totalorder %s2050_s16, 3 }
   0xb   : > { %p87_p3 = scmp.ne.s32.totalorder %s1991_s13, %s1987_s12  ;;  %p88_p4 = scmp.eq.s32.totalorder %s1584_s17, 3 }
   0xc   : > { %s2065_s21 = scalar_select %p69_p1, %s1995_s14, %s71_s19  }
   0xd   : > { %p2067_p5 = por %p82_p2, %p81_p0  ;;  %p2071_p6 = por %p88_p4, %p87_p3 }
   0xe   : > { %p1585_p7 = scmp.ge.s32.totalorder %s1999_s15, 1  ;;  %p121_p8 = scmp.lt.s32.totalorder %s1999_s15, 5 }
   0xf   : > { %p1632_p9 = scmp.eq.s32.totalorder %s2050_s16, 0  ;;  %s132_s27 = sshll.u32 %s2849_s0, 4  ;;  %s133_s27 = int_to_ptr.hbm [resolvable:$true] %s132_s27 }
  0x10   : > { %p2078_p10 = pnand %p1585_p7, %p121_p8  ;;  %s2001_s28 = smov [#allocation2]  }
  0x11   : > { %s134_s29 = sshll.u32 %s2001_s28, 4  ;;  %s146_s5 = sshll.u32 %s2850_s1, 4  ;;  %s135_s29 = int_to_ptr.vmem [resolvable:$true] %s134_s29  ;;  %s147_s5 = int_to_ptr.hbm [resolvable:$true] %s146_s5 }
  0x12   : > { %p1618_p11 = pneg %p2078_p10  ;;  %s2002_s6 = smov 128  }
  0x13   : > { %s2003_s7 = smov 8   ;;  %s2004_s8 = smov [#allocation5]  }
  0x14   : > { %p1619_p12 = pnand %p1632_p9, %p1618_p11  ;;  %s148_s9 = sshll.u32 %s2004_s8, 4  ;;  %s149_s9 = int_to_ptr.vmem [resolvable:$true] %s148_s9 }
  0x15   : > { %164 = sbr.rel (%p2078_p10) target bundleno = 635 (0x27b), region = 28 }
  0x16   : > { %1621 = dma.hbm_to_vmem [thread:$0]  (!%p1619_p12), %s133_s27, 8192, %s135_s29, [#allocation3], %s2002_s6, %s2002_s6, %s2003_s7  }
  0x17   : > { %1624 = dma.hbm_to_vmem [thread:$0]  (!%p1619_p12), %s147_s5, 8192, %s149_s9, [#allocation6], %s2002_s6, %s2002_s6, %s2003_s7  }
  0x1a   : > { %1970 = dma.done.wait (%p1632_p9), [#allocation3], 8192  }
  0x1b   : > { %1972 = vsyncadd (%p1632_p9), [#allocation3], 4294959104 }
  0x1c   : > { %1974 = dma.done.wait (%p1632_p9), [#allocation6], 8192  }
  0x1d   : > { %1976 = vsyncadd (%p1632_p9), [#allocation6], 4294959104  ;;  %v261_v0 = vld [vmem:[#allocation2 + $0x178] sm:$0xff]  ;;  %v260_v4 = vld [vmem:[#allocation2 + $0x170] sm:$0xff]  ;;  %s1593_s10 = sshll.u32 %s2050_s16, 7  ;;  %s2636_s17 = sand.u32 1, %s1991_s13  }
  0x1e   : > { %v277_v1 = vld [vmem:[#allocation2 + $0x1f8] sm:$0xff]  ;;  %472 = vmatpush.xpose.msra.mxu2 %v261_v0  ;;  %v276_v5 = vld [vmem:[#allocation2 + $0x1f0] sm:$0xff]  ;;  %v259_v8 = vld [vmem:[#allocation2 + $0x168] sm:$0xff]  ;;  %s2105_s11 = scalar_lea.vmem [#allocation5], %s1593_s10  ;;  %s1592_s19 = sshll.u32 %s2636_s17, 9 }
  0x1f   : > { %v229_v2 = vld [vmem:[#allocation2 + $0x78] sm:$0xff]  ;;  %537 = vmatpush.xpose.msra.mxu3 %v277_v1  ;;  %v228_v6 = vld [vmem:[#allocation2 + $0x70] sm:$0xff]  ;;  %v275_v9 = vld [vmem:[#allocation2 + $0x1e8] sm:$0xff]  ;;  %s1591_s20 = sshll.u32 %s2636_s17, 7  ;;  %s2644_s24 = scalar_lea.vmem [#allocation8], %s1592_s19 }
  0x20   : > { %v245_v3 = vld [vmem:[#allocation2 + $0xf8] sm:$0xff]  ;;  %342 = vmatpush.xpose.msra.mxu0 %v229_v2  ;;  %v244_v7 = vld [vmem:[#allocation2 + $0xf0] sm:$0xff]  ;;  %v227_v10 = vld [vmem:[#allocation2 + $0x68] sm:$0xff]  ;;  %s2650_s25 = scalar_lea.vmem [#allocation7], %s1591_s20  ;;  %s1455_s28 = scalar_lea.hbm %s2851_s2, %s1593_s10 }
  0x21   : > { %407 = vmatpush.xpose.msra.mxu1 %v245_v3  ;;  %v243_v11 = vld [vmem:[#allocation2 + $0xe8] sm:$0xff]  ;;  %v258_v12 = vld [vmem:[#allocation2 + $0x160] sm:$0xff]  ;;  %v257_v16 = vld [vmem:[#allocation2 + $0x158] sm:$0xff]  ;;  %s1605_s29 = sshll.u32 %s2050_s16, 9  ;;  %s1458_s30 = sshll.u32 %s1455_s28, 4  ;;  %s2788_s30 = int_to_ptr.hbm [resolvable:$true] %s1458_s30 }
  0x22   : > { %473 = vmatpush.xpose.msra.mxu2 %v260_v4  ;;  %v274_v13 = vld [vmem:[#allocation2 + $0x1e0] sm:$0xff]  ;;  %v273_v17 = vld [vmem:[#allocation2 + $0x1d8] sm:$0xff]  ;;  %v256_v20 = vld [vmem:[#allocation2 + $0x150] sm:$0xff]  ;;  %s1473_s6 = scalar_lea.hbm %s2852_s3, %s1605_s29  ;;  %s1456_s16 = sshll.u32 %s2650_s25, 4  ;;  %s1457_s16 = int_to_ptr.vmem [resolvable:$true] %s1456_s16 }
  0x23   : > { %538 = vmatpush.xpose.msra.mxu3 %v276_v5  ;;  %v226_v14 = vld [vmem:[#allocation2 + $0x60] sm:$0xff]  ;;  %v225_v18 = vld [vmem:[#allocation2 + $0x58] sm:$0xff]  ;;  %v272_v21 = vld [vmem:[#allocation2 + $0x1d0] sm:$0xff]  ;;  %s1474_s7 = sshll.u32 %s2644_s24, 4  ;;  %s1476_s8 = sshll.u32 %s1473_s6, 4  ;;  %s2799_s7 = int_to_ptr.vmem [resolvable:$true] %s1474_s7  ;;  %s2801_s8 = int_to_ptr.hbm [resolvable:$true] %s1476_s8 }
  0x24   : > { %343 = vmatpush.xpose.msra.mxu0 %v228_v6  ;;  %v242_v15 = vld [vmem:[#allocation2 + $0xe0] sm:$0xff]  ;;  %v241_v19 = vld [vmem:[#allocation2 + $0xd8] sm:$0xff]  ;;  %v224_v22 = vld [vmem:[#allocation2 + $0x50] sm:$0xff]  ;;  %s1439_s9 = scalar_lea.sflag [#allocation4], %s2636_s17  ;;  %s1911_s10 = sshra.s32 %s2788_s30, 4  ;;  %s1912_s10 = int_to_ptr.hbm [resolvable:$true] %s1911_s10 }
  0x25   : > { %408 = vmatpush.xpose.msra.mxu1 %v244_v7  ;;  %v240_v23 = vld [vmem:[#allocation2 + $0xd0] sm:$0xff]  ;;  %v255_v24 = vld [vmem:[#allocation2 + $0x148] sm:$0xff]  ;;  %v254_v28 = vld [vmem:[#allocation2 + $0x140] sm:$0xff]  ;;  %s1917_s26 = scalar_lea.hbm %s2851_s2, 512  ;;  %p1918_p2 = scmp.lt.s32.totalorder %s1912_s10, %s2851_s2 }
  0x26   : > { %474 = vmatpush.xpose.msra.mxu2 %v259_v8  ;;  %v271_v25 = vld [vmem:[#allocation2 + $0x1c8] sm:$0xff]  ;;  %v270_v29 = vld [vmem:[#allocation2 + $0x1c0] sm:$0xff]  ;;  %v253_v32 = vld [vmem:[#allocation2 + $0x138] sm:$0xff] }
  0x27   : > { %539 = vmatpush.xpose.msra.mxu3 %v275_v9  ;;  %v223_v26 = vld [vmem:[#allocation2 + $0x48] sm:$0xff]  ;;  %v222_v30 = vld [vmem:[#allocation2 + $0x40] sm:$0xff]  ;;  %v269_v33 = vld [vmem:[#allocation2 + $0x1b8] sm:$0xff] }
  0x28   : > { %344 = vmatpush.xpose.msra.mxu0 %v227_v10  ;;  %v239_v27 = vld [vmem:[#allocation2 + $0xc8] sm:$0xff]  ;;  %v238_v31 = vld [vmem:[#allocation2 + $0xc0] sm:$0xff]  ;;  %v221_v34 = vld [vmem:[#allocation2 + $0x38] sm:$0xff] }
  0x29   : > { %409 = vmatpush.xpose.msra.mxu1 %v243_v11  ;;  %v237_v35 = vld [vmem:[#allocation2 + $0xb8] sm:$0xff]  ;;  %v252_v36 = vld [vmem:[#allocation2 + $0x130] sm:$0xff]  ;;  %v251_v40 = vld [vmem:[#allocation2 + $0x128] sm:$0xff] }
  0x2a   : > { %475 = vmatpush.xpose.msra.mxu2 %v258_v12  ;;  %v268_v37 = vld [vmem:[#allocation2 + $0x1b0] sm:$0xff]  ;;  %v267_v41 = vld [vmem:[#allocation2 + $0x1a8] sm:$0xff]  ;;  %v250_v44 = vld [vmem:[#allocation2 + $0x120] sm:$0xff] }
  0x2b   : > { %540 = vmatpush.xpose.msra.mxu3 %v274_v13  ;;  %v220_v38 = vld [vmem:[#allocation2 + $0x30] sm:$0xff]  ;;  %v219_v42 = vld [vmem:[#allocation2 + $0x28] sm:$0xff]  ;;  %v266_v45 = vld [vmem:[#allocation2 + $0x1a0] sm:$0xff] }
  0x2c   : > { %345 = vmatpush.xpose.msra.mxu0 %v226_v14  ;;  %v236_v39 = vld [vmem:[#allocation2 + $0xb0] sm:$0xff]  ;;  %v235_v43 = vld [vmem:[#allocation2 + $0xa8] sm:$0xff]  ;;  %v218_v46 = vld [vmem:[#allocation2 + $0x20] sm:$0xff] }
  0x2d   : > { %410 = vmatpush.xpose.msra.mxu1 %v242_v15  ;;  %v234_v47 = vld [vmem:[#allocation2 + $0xa0] sm:$0xff]  ;;  %v249_v48 = vld [vmem:[#allocation2 + $0x118] sm:$0xff]  ;;  %v248_v52 = vld [vmem:[#allocation2 + $0x110] sm:$0xff] }
  0x2e   : > { %476 = vmatpush.xpose.msra.mxu2 %v257_v16  ;;  %v265_v49 = vld [vmem:[#allocation2 + $0x198] sm:$0xff]  ;;  %v264_v53 = vld [vmem:[#allocation2 + $0x190] sm:$0xff]  ;;  %v247_v56 = vld [vmem:[#allocation2 + $0x108] sm:$0xff] }
  0x2f   : > { %541 = vmatpush.xpose.msra.mxu3 %v273_v17  ;;  %v217_v50 = vld [vmem:[#allocation2 + $0x18] sm:$0xff]  ;;  %v216_v54 = vld [vmem:[#allocation2 + $0x10] sm:$0xff]  ;;  %v263_v57 = vld [vmem:[#allocation2 + $0x188] sm:$0xff] }
  0x30   : > { %346 = vmatpush.xpose.msra.mxu0 %v225_v18  ;;  %v233_v51 = vld [vmem:[#allocation2 + $0x98] sm:$0xff]  ;;  %v232_v55 = vld [vmem:[#allocation2 + $0x90] sm:$0xff]  ;;  %v215_v58 = vld [vmem:[#allocation2 + $0x8] sm:$0xff] }
  0x31   : > { %411 = vmatpush.xpose.msra.mxu1 %v241_v19  ;;  %v231_v59 = vld [vmem:[#allocation2 + $0x88] sm:$0xff]  ;;  %v246_v60 = vld [vmem:[#allocation2 + $0x100] sm:$0xff]  ;;  %v200_v2 = vld [vmem:[%s2105_s11 + $0x10] sm:$0xff] }
  0x32   : > { %477 = vmatpush.xpose.msra.mxu2 %v256_v20  ;;  %v262_v61 = vld [vmem:[#allocation2 + $0x180] sm:$0xff]  ;;  %v199_v1 = vld [vmem:[%s2105_s11 + $0x8] sm:$0xff]  ;;  %v201_v3 = vld [vmem:[%s2105_s11 + $0x18] sm:$0xff] }
  0x33   : > { %542 = vmatpush.xpose.msra.mxu3 %v272_v21  ;;  %v214_v62 = vld [vmem:[#allocation2] sm:$0xff]  ;;  %v203_v5 = vld [vmem:[%s2105_s11 + $0x28] sm:$0xff]  ;;  %v204_v6 = vld [vmem:[%s2105_s11 + $0x30] sm:$0xff] }
  0x34   : > { %347 = vmatpush.xpose.msra.mxu0 %v224_v22  ;;  %v230_v63 = vld [vmem:[#allocation2 + $0x80] sm:$0xff]  ;;  %v205_v7 = vld [vmem:[%s2105_s11 + $0x38] sm:$0xff]  ;;  %v207_v9 = vld [vmem:[%s2105_s11 + $0x48] sm:$0xff] }
  0x35   : > { %412 = vmatpush.xpose.msra.mxu1 %v240_v23  ;;  %v198_v0 = vld [vmem:[%s2105_s11] sm:$0xff]  ;;  %v208_v10 = vld [vmem:[%s2105_s11 + $0x50] sm:$0xff]  ;;  %v209_v11 = vld [vmem:[%s2105_s11 + $0x58] sm:$0xff] }
  0x36   : > { %478 = vmatpush.xpose.msra.mxu2 %v255_v24  ;;  %v202_v4 = vld [vmem:[%s2105_s11 + $0x20] sm:$0xff]  ;;  %v325_v13 = vld [vmem:[#allocation5 + $0x178] sm:$0xff]  ;;  %v211_v14 = vld [vmem:[%s2105_s11 + $0x68] sm:$0xff] }
  0x37   : > { %543 = vmatpush.xpose.msra.mxu3 %v271_v25  ;;  %v206_v8 = vld [vmem:[%s2105_s11 + $0x40] sm:$0xff]  ;;  %v341_v15 = vld [vmem:[#allocation5 + $0x1f8] sm:$0xff]  ;;  %v324_v18 = vld [vmem:[#allocation5 + $0x170] sm:$0xff] }
  0x38   : > { %348 = vmatpush.xpose.msra.mxu0 %v223_v26  ;;  %v210_v12 = vld [vmem:[%s2105_s11 + $0x60] sm:$0xff]  ;;  %v293_v16 = vld [vmem:[#allocation5 + $0x78] sm:$0xff]  ;;  %v212_v19 = vld [vmem:[%s2105_s11 + $0x70] sm:$0xff] }
  0x39   : > { %413 = vmatpush.xpose.msra.mxu1 %v239_v27  ;;  %v309_v17 = vld [vmem:[#allocation5 + $0xf8] sm:$0xff]  ;;  %v340_v20 = vld [vmem:[#allocation5 + $0x1f0] sm:$0xff]  ;;  %v323_v23 = vld [vmem:[#allocation5 + $0x168] sm:$0xff] }
  0x3a   : > { %479 = vmatpush.xpose.msra.mxu2 %v254_v28  ;;  %v292_v21 = vld [vmem:[#allocation5 + $0x70] sm:$0xff]  ;;  %v213_v24 = vld [vmem:[%s2105_s11 + $0x78] sm:$0xff]  ;;  %v339_v25 = vld [vmem:[#allocation5 + $0x1e8] sm:$0xff]  ;;  %s1913_s11 = scalar_lea.hbm %s1912_s10, 128 }
  0x3b   : > { %544 = vmatpush.xpose.msra.mxu3 %v270_v29  ;;  %v308_v22 = vld [vmem:[#allocation5 + $0xf0] sm:$0xff]  ;;  %v291_v26 = vld [vmem:[#allocation5 + $0x68] sm:$0xff]  ;;  %v322_v28 = vld [vmem:[#allocation5 + $0x160] sm:$0xff]  ;;  %p1914_p13 = scmp.ne.s32.totalorder %s1912_s10, %s1913_s11  ;;  %p1919_p3 = scmp.lt.s32.totalorder %s1917_s26, %s1913_s11 }
  0x3c   : > { %349 = vmatpush.xpose.msra.mxu0 %v222_v30  ;;  %v307_v27 = vld [vmem:[#allocation5 + $0xe8] sm:$0xff] }
  0x3d   : > { %414 = vmatpush.xpose.msra.mxu1 %v238_v31  ;;  %p1915_p0 = pnand %p1914_p13, %p2067_p5  ;;  %p1920_p4 = por %p1919_p3, %p1918_p2 }
  0x3e   : > { %480 = vmatpush.xpose.msra.mxu2 %v253_v32  ;;  %v338_v32 = vld [vmem:[#allocation5 + $0x1e0] sm:$0xff] }
  0x3f   : > { %545 = vmatpush.xpose.msra.mxu3 %v269_v33  ;;  %p1916_p1 = pneg %p1915_p0 }
  0x40   : > { %350 = vmatpush.xpose.msra.mxu0 %v221_v34 }
  0x41   : > { %415 = vmatpush.xpose.msra.mxu1 %v237_v35  ;;  %v290_v35 = vld [vmem:[#allocation5 + $0x60] sm:$0xff]  ;;  %p1921_p7 = pnand %p1920_p4, %p1916_p1 }
  0x42   : > { %481 = vmatpush.xpose.msra.mxu2 %v252_v36  ;;  %v306_v36 = vld [vmem:[#allocation5 + $0xe0] sm:$0xff] }
  0x43   : > { %546 = vmatpush.xpose.msra.mxu3 %v268_v37  ;;  %v321_v37 = vld [vmem:[#allocation5 + $0x158] sm:$0xff] }
  0x44   : > { %351 = vmatpush.xpose.msra.mxu0 %v220_v38 }
  0x45   : > { %416 = vmatpush.xpose.msra.mxu1 %v236_v39 }
  0x46   : > { %482 = vmatpush.xpose.msra.mxu2 %v251_v40 }
  0x47   : > { %547 = vmatpush.xpose.msra.mxu3 %v267_v41 }
  0x48   : > { %352 = vmatpush.xpose.msra.mxu0 %v219_v42 }
  0x49   : > { %417 = vmatpush.xpose.msra.mxu1 %v235_v43  ;;  %v337_v43 = vld [vmem:[#allocation5 + $0x1d8] sm:$0xff] }
  0x4a   : > { %483 = vmatpush.xpose.msra.mxu2 %v250_v44 }
  0x4b   : > { %548 = vmatpush.xpose.msra.mxu3 %v266_v45 }
  0x4c   : > { %353 = vmatpush.xpose.msra.mxu0 %v218_v46  ;;  %v289_v46 = vld [vmem:[#allocation5 + $0x58] sm:$0xff] }
  0x4d   : > { %418 = vmatpush.xpose.msra.mxu1 %v234_v47  ;;  %v305_v47 = vld [vmem:[#allocation5 + $0xd8] sm:$0xff] }
  0x4e   : > { %484 = vmatpush.xpose.msra.mxu2 %v249_v48  ;;  %v320_v48 = vld [vmem:[#allocation5 + $0x150] sm:$0xff] }
  0x4f   : > { %549 = vmatpush.xpose.msra.mxu3 %v265_v49 }
  0x50   : > { %354 = vmatpush.xpose.msra.mxu0 %v217_v50 }
  0x51   : > { %419 = vmatpush.xpose.msra.mxu1 %v233_v51 }
  0x52   : > { %485 = vmatpush.xpose.msra.mxu2 %v248_v52 }
  0x53   : > { %550 = vmatpush.xpose.msra.mxu3 %v264_v53 }
  0x54   : > { %355 = vmatpush.xpose.msra.mxu0 %v216_v54  ;;  %v336_v54 = vld [vmem:[#allocation5 + $0x1d0] sm:$0xff] }
  0x55   : > { %420 = vmatpush.xpose.msra.mxu1 %v232_v55 }
  0x56   : > { %486 = vmatpush.xpose.msra.mxu2 %v247_v56 }
  0x57   : > { %551 = vmatpush.xpose.msra.mxu3 %v263_v57  ;;  %v288_v57 = vld [vmem:[#allocation5 + $0x50] sm:$0xff] }
  0x58   : > { %356 = vmatpush.xpose.msra.mxu0 %v215_v58  ;;  %v304_v58 = vld [vmem:[#allocation5 + $0xd0] sm:$0xff] }
  0x59   : > { %421 = vmatpush.xpose.msra.mxu1 %v231_v59  ;;  %v319_v59 = vld [vmem:[#allocation5 + $0x148] sm:$0xff] }
  0x5a   : > { %487 = vmatpush.xpose.msra.mxu2 %v246_v60 }
  0x5b   : > { %552 = vmatpush.xpose.msra.mxu3 %v262_v61 }
  0x5c   : > { %357 = vmatpush.xpose.msra.mxu0 %v214_v62 }
  0x5d   : > { %422 = vmatpush.xpose.msra.mxu1 %v230_v63  ;;  %488 = vmatmul.f32.vlgmr.msra.gmra.mxu2 %v198_v0 }
  0x5e   : > { %553 = vmatmul.f32.vlgmr.msra.gmra.mxu3 %v198_v0  ;;  %1276 = vmatpush.msrb.mxu2 %v325_v13 }
  0x5f   : > { %358 = vmatmul.f32.vlgmr.msra.gmra.mxu0 %v198_v0  ;;  %1341 = vmatpush.msrb.mxu3 %v341_v15 }
  0x60   : > { %423 = vmatmul.f32.vlgmr.msra.gmra.mxu1 %v198_v0  ;;  %1146 = vmatpush.msrb.mxu0 %v293_v16  ;;  %v286_v16 = vld [vmem:[#allocation5 + $0x40] sm:$0xff] }
  0x61   : > { %1211 = vmatpush.msrb.mxu1 %v309_v17  ;;  %1277 = vmatpush.msrb.mxu2 %v324_v18  ;;  %v302_v17 = vld [vmem:[#allocation5 + $0xc0] sm:$0xff]  ;;  %v317_v18 = vld [vmem:[#allocation5 + $0x138] sm:$0xff] }
  0x62   : > { %1342 = vmatpush.msrb.mxu3 %v340_v20  ;;  %1147 = vmatpush.msrb.mxu0 %v292_v21 }
  0x63   : > { %1212 = vmatpush.msrb.mxu1 %v308_v22  ;;  %1278 = vmatpush.msrb.mxu2 %v323_v23  ;;  %v333_v23 = vld [vmem:[#allocation5 + $0x1b8] sm:$0xff] }
  0x64   : > { %1343 = vmatpush.msrb.mxu3 %v339_v25  ;;  %1148 = vmatpush.msrb.mxu0 %v291_v26 }
  0x65   : > { %491 = vmatmul.f32.gmra.mxu2 %v199_v1  ;;  %1213 = vmatpush.msrb.mxu1 %v307_v27  ;;  %v285_v27 = vld [vmem:[#allocation5 + $0x38] sm:$0xff] }
  0x66   : > { %556 = vmatmul.f32.gmra.mxu3 %v199_v1  ;;  %1279 = vmatpush.msrb.mxu2 %v322_v28  ;;  %v301_v28 = vld [vmem:[#allocation5 + $0xb8] sm:$0xff] }
  0x67   : > { %361 = vmatmul.f32.gmra.mxu0 %v199_v1  ;;  %1344 = vmatpush.msrb.mxu3 %v338_v32 }
  0x68   : > { %426 = vmatmul.f32.gmra.mxu1 %v199_v1  ;;  %1149 = vmatpush.msrb.mxu0 %v290_v35  ;;  %v335_v1 = vld [vmem:[#allocation5 + $0x1c8] sm:$0xff] }
  0x69   : > { %1214 = vmatpush.msrb.mxu1 %v306_v36  ;;  %1280 = vmatpush.msrb.mxu2 %v321_v37 }
  0x6a   : > { %1345 = vmatpush.msrb.mxu3 %v337_v43  ;;  %1150 = vmatpush.msrb.mxu0 %v289_v46  ;;  %v284_v46 = vld [vmem:[#allocation5 + $0x30] sm:$0xff] }
  0x6b   : > { %1215 = vmatpush.msrb.mxu1 %v305_v47  ;;  %1281 = vmatpush.msrb.mxu2 %v320_v48  ;;  %v300_v47 = vld [vmem:[#allocation5 + $0xb0] sm:$0xff]  ;;  %v315_v48 = vld [vmem:[#allocation5 + $0x128] sm:$0xff] }
  0x6c   : > { %1346 = vmatpush.msrb.mxu3 %v336_v54  ;;  %1151 = vmatpush.msrb.mxu0 %v288_v57  ;;  %v331_v57 = vld [vmem:[#allocation5 + $0x1a8] sm:$0xff] }
  0x6d   : > { %494 = vmatmul.f32.gmra.mxu2 %v200_v2  ;;  %1216 = vmatpush.msrb.mxu1 %v304_v58 }
  0x6e   : > { %559 = vmatmul.f32.gmra.mxu3 %v200_v2  ;;  %1282 = vmatpush.msrb.mxu2 %v319_v59 }
  0x6f   : > { %364 = vmatmul.f32.gmra.mxu0 %v200_v2  ;;  %1347 = vmatpush.msrb.mxu3 %v335_v1  ;;  %v314_v1 = vld [vmem:[#allocation5 + $0x120] sm:$0xff] }
  0x70   : > { %429 = vmatmul.f32.gmra.mxu1 %v200_v2 }
  0x75   : > { %497 = vmatmul.f32.gmra.mxu2 %v201_v3 }
  0x76   : > { %562 = vmatmul.f32.gmra.mxu3 %v201_v3 }
  0x77   : > { %367 = vmatmul.f32.gmra.mxu0 %v201_v3 }
  0x78   : > { %432 = vmatmul.f32.gmra.mxu1 %v201_v3 }
  0x7d   : > { %500 = vmatmul.f32.gmra.mxu2 %v202_v4 }
  0x7e   : > { %565 = vmatmul.f32.gmra.mxu3 %v202_v4 }
  0x7f   : > { %370 = vmatmul.f32.gmra.mxu0 %v202_v4 }
  0x80   : > { %435 = vmatmul.f32.gmra.mxu1 %v202_v4  ;;  %v287_v4 = vld [vmem:[#allocation5 + $0x48] sm:$0xff] }
  0x81   : > { %1152 = vmatpush.msrb.mxu0 %v287_v4 }
  0x83   : > { %1153 = vmatpush.msrb.mxu0 %v286_v16  ;;  %v282_v16 = vld [vmem:[#allocation5 + $0x20] sm:$0xff] }
  0x85   : > { %503 = vmatmul.f32.gmra.mxu2 %v203_v5  ;;  %1154 = vmatpush.msrb.mxu0 %v285_v27  ;;  %v329_v27 = vld [vmem:[#allocation5 + $0x198] sm:$0xff] }
  0x86   : > { %568 = vmatmul.f32.gmra.mxu3 %v203_v5 }
  0x87   : > { %373 = vmatmul.f32.gmra.mxu0 %v203_v5 }
  0x88   : > { %438 = vmatmul.f32.gmra.mxu1 %v203_v5  ;;  %v303_v5 = vld [vmem:[#allocation5 + $0xc8] sm:$0xff]  ;;  %1155 = vmatpush.msrb.mxu0 %v284_v46 }
  0x89   : > { %1217 = vmatpush.msrb.mxu1 %v303_v5 }
  0x8b   : > { %1218 = vmatpush.msrb.mxu1 %v302_v17  ;;  %v298_v17 = vld [vmem:[#allocation5 + $0xa0] sm:$0xff] }
  0x8d   : > { %506 = vmatmul.f32.gmra.mxu2 %v204_v6  ;;  %1219 = vmatpush.msrb.mxu1 %v301_v28 }
  0x8e   : > { %571 = vmatmul.f32.gmra.mxu3 %v204_v6 }
  0x8f   : > { %376 = vmatmul.f32.gmra.mxu0 %v204_v6  ;;  %1220 = vmatpush.msrb.mxu1 %v300_v47 }
  0x90   : > { %441 = vmatmul.f32.gmra.mxu1 %v204_v6  ;;  %v318_v6 = vld [vmem:[#allocation5 + $0x140] sm:$0xff] }
  0x91   : > { %1283 = vmatpush.msrb.mxu2 %v318_v6 }
  0x93   : > { %1284 = vmatpush.msrb.mxu2 %v317_v18  ;;  %v313_v18 = vld [vmem:[#allocation5 + $0x118] sm:$0xff] }
  0x95   : > { %509 = vmatmul.f32.gmra.mxu2 %v205_v7 }
  0x96   : > { %574 = vmatmul.f32.gmra.mxu3 %v205_v7 }
  0x97   : > { %379 = vmatmul.f32.gmra.mxu0 %v205_v7 }
  0x98   : > { %444 = vmatmul.f32.gmra.mxu1 %v205_v7 }
  0x9d   : > { %512 = vmatmul.f32.gmra.mxu2 %v206_v8 }
  0x9e   : > { %577 = vmatmul.f32.gmra.mxu3 %v206_v8 }
  0x9f   : > { %382 = vmatmul.f32.gmra.mxu0 %v206_v8 }
  0xa0   : > { %447 = vmatmul.f32.gmra.mxu1 %v206_v8 }
  0xa5   : > { %515 = vmatmul.f32.gmra.mxu2 %v207_v9 }
  0xa6   : > { %580 = vmatmul.f32.gmra.mxu3 %v207_v9 }
  0xa7   : > { %385 = vmatmul.f32.gmra.mxu0 %v207_v9 }
  0xa8   : > { %450 = vmatmul.f32.gmra.mxu1 %v207_v9 }
  0xad   : > { %518 = vmatmul.f32.gmra.mxu2 %v208_v10 }
  0xae   : > { %583 = vmatmul.f32.gmra.mxu3 %v208_v10 }
  0xaf   : > { %388 = vmatmul.f32.gmra.mxu0 %v208_v10 }
  0xb0   : > { %453 = vmatmul.f32.gmra.mxu1 %v208_v10 }
  0xb5   : > { %521 = vmatmul.f32.gmra.mxu2 %v209_v11 }
  0xb6   : > { %586 = vmatmul.f32.gmra.mxu3 %v209_v11 }
  0xb7   : > { %391 = vmatmul.f32.gmra.mxu0 %v209_v11 }
  0xb8   : > { %456 = vmatmul.f32.gmra.mxu1 %v209_v11 }
  0xbd   : > { %524 = vmatmul.f32.gmra.mxu2 %v210_v12 }
  0xbe   : > { %589 = vmatmul.f32.gmra.mxu3 %v210_v12 }
  0xbf   : > { %394 = vmatmul.f32.gmra.mxu0 %v210_v12 }
  0xc0   : > { %459 = vmatmul.f32.gmra.mxu1 %v210_v12  ;;  %v334_v12 = vld [vmem:[#allocation5 + $0x1c0] sm:$0xff] }
  0xc1   : > { %1348 = vmatpush.msrb.mxu3 %v334_v12 }
  0xc3   : > { %1349 = vmatpush.msrb.mxu3 %v333_v23 }
  0xc5   : > { %527 = vmatmul.f32.gmra.mxu2 %v211_v14 }
  0xc6   : > { %592 = vmatmul.f32.gmra.mxu3 %v211_v14 }
  0xc7   : > { %397 = vmatmul.f32.gmra.mxu0 %v211_v14 }
  0xc8   : > { %462 = vmatmul.f32.gmra.mxu1 %v211_v14 }
  0xcd   : > { %530 = vmatmul.f32.gmra.mxu2 %v212_v19 }
  0xce   : > { %595 = vmatmul.f32.gmra.mxu3 %v212_v19 }
  0xcf   : > { %400 = vmatmul.f32.gmra.mxu0 %v212_v19 }
  0xd0   : > { %465 = vmatmul.f32.gmra.mxu1 %v212_v19 }
  0xd5   : > { %533 = vmatmul.f32.gmra.mxu2 %v213_v24 }
  0xd6   : > { %598 = vmatmul.f32.gmra.mxu3 %v213_v24 }
  0xd7   : > { %403 = vmatmul.f32.gmra.mxu0 %v213_v24 }
  0xd8   : > { %468 = vmatmul.f32.gmra.mxu1 %v213_v24 }
  0xdc   : > { %v2123_v29 = vpop.f32.mrf.mxu0 }
  0xdd   : > { %v2125_v30 = vpop.f32.mrf.mxu1 }
  0xde   : > { %v602_v31 = vmax.f32 %v2123_v29, %v2125_v30 }
  0xe0   : > { %v2129_v33 = vpop.f32.mrf.mxu2 }
  0xe1   : > { %v2131_v34 = vpop.f32.mrf.mxu3  ;;  %v603_v38 = vmax.f32 %v602_v31, %v2129_v33  ;;  %v316_v31 = vld [vmem:[#allocation5 + $0x130] sm:$0xff] }
  0xe2   : > { %1285 = vmatpush.msrb.mxu2 %v316_v31 }
  0xe3   : > { %v604_v39 = vmax.f32 %v603_v38, %v2131_v34  ;;  %v332_v38 = vld [vmem:[#allocation5 + $0x1b0] sm:$0xff] }
  0xe4   : > { %v2135_v40 = vpop.f32.mrf.mxu0  ;;  %1350 = vmatpush.msrb.mxu3 %v332_v38  ;;  %1286 = vmatpush.msrb.mxu2 %v315_v48  ;;  %v297_v38 = vld [vmem:[#allocation5 + $0x98] sm:$0xff] }
  0xe5   : > { %v2137_v41 = vpop.f32.mrf.mxu1  ;;  %605 = vmax.xlane.f32.xlu0 %v604_v39 }
  0xe6   : > { %v607_v42 = vmax.f32 %v2135_v40, %v2137_v41  ;;  %1351 = vmatpush.msrb.mxu3 %v331_v57  ;;  %1287 = vmatpush.msrb.mxu2 %v314_v1  ;;  %v296_v1 = vld [vmem:[#allocation5 + $0x90] sm:$0xff] }
  0xe8   : > { %v2141_v44 = vpop.f32.mrf.mxu2  ;;  %1288 = vmatpush.msrb.mxu2 %v313_v18 }
  0xe9   : > { %v2143_v45 = vpop.f32.mrf.mxu3  ;;  %v608_v49 = vmax.f32 %v607_v42, %v2141_v44 }
  0xeb   : > { %v609_v50 = vmax.f32 %v608_v49, %v2143_v45 }
  0xec   : > { %v2147_v51 = vpop.f32.mrf.mxu0 }
  0xed   : > { %v2149_v52 = vpop.f32.mrf.mxu1  ;;  %610 = vmax.xlane.f32.xlu0 %v609_v50 }
  0xee   : > { %v612_v53 = vmax.f32 %v2147_v51, %v2149_v52 }
  0xf0   : > { %v2153_v55 = vpop.f32.mrf.mxu2 }
  0xf1   : > { %v2155_v56 = vpop.f32.mrf.mxu3  ;;  %v613_v60 = vmax.f32 %v612_v53, %v2153_v55 }
  0xf3   : > { %v614_v61 = vmax.f32 %v613_v60, %v2155_v56 }
  0xf4   : > { %v2159_v62 = vpop.f32.mrf.mxu0 }
  0xf5   : > { %v2161_v63 = vpop.f32.mrf.mxu1  ;;  %615 = vmax.xlane.f32.xlu1 %v614_v61  ;;  %v283_v61 = vld [vmem:[#allocation5 + $0x28] sm:$0xff] }
  0xf6   : > { %v617_v0 = vmax.f32 %v2159_v62, %v2161_v63  ;;  %1156 = vmatpush.msrb.mxu0 %v283_v61 }
  0xf8   : > { %v2165_v2 = vpop.f32.mrf.mxu2  ;;  %1157 = vmatpush.msrb.mxu0 %v282_v16 }
  0xf9   : > { %v2167_v3 = vpop.f32.mrf.mxu3  ;;  %v618_v7 = vmax.f32 %v617_v0, %v2165_v2  ;;  %v299_v0 = vld [vmem:[#allocation5 + $0xa8] sm:$0xff] }
  0xfa   : > { %1221 = vmatpush.msrb.mxu1 %v299_v0  ;;  %v280_v0 = vld [vmem:[#allocation5 + $0x10] sm:$0xff] }
  0xfb   : > { %v619_v8 = vmax.f32 %v618_v7, %v2167_v3 }
  0xfc   : > { %v2171_v9 = vpop.f32.mrf.mxu0  ;;  %1222 = vmatpush.msrb.mxu1 %v298_v17  ;;  %v327_v17 = vld [vmem:[#allocation5 + $0x188] sm:$0xff] }
  0xfd   : > { %v2173_v10 = vpop.f32.mrf.mxu1  ;;  %620 = vmax.xlane.f32.xlu1 %v619_v8  ;;  %v330_v8 = vld [vmem:[#allocation5 + $0x1a0] sm:$0xff] }
  0xfe   : > { %v622_v11 = vmax.f32 %v2171_v9, %v2173_v10  ;;  %1352 = vmatpush.msrb.mxu3 %v330_v8  ;;  %1223 = vmatpush.msrb.mxu1 %v297_v38 }
 0x100   : > { %v2177_v13 = vpop.f32.mrf.mxu2  ;;  %1353 = vmatpush.msrb.mxu3 %v329_v27  ;;  %1224 = vmatpush.msrb.mxu1 %v296_v1  ;;  %v279_v27 = vld [vmem:[#allocation5 + $0x8] sm:$0xff]  ;;  %v278_v1 = vld [vmem:[#allocation5] sm:$0xff] }
 0x101   : > { %v2179_v14 = vpop.f32.mrf.mxu3  ;;  %v623_v15 = vmax.f32 %v622_v11, %v2177_v13 }
 0x103   : > { %v624_v19 = vmax.f32 %v623_v15, %v2179_v14 }
 0x104   : > { %v2183_v20 = vpop.f32.mrf.mxu0 }
 0x105   : > { %v2185_v21 = vpop.f32.mrf.mxu1  ;;  %625 = vmax.xlane.f32.xlu2 %v624_v19 }
 0x106   : > { %v627_v22 = vmax.f32 %v2183_v20, %v2185_v21 }
 0x108   : > { %v2189_v24 = vpop.f32.mrf.mxu2 }
 0x109   : > { %v2191_v25 = vpop.f32.mrf.mxu3  ;;  %v628_v26 = vmax.f32 %v627_v22, %v2189_v24 }
 0x10b   : > { %v629_v32 = vmax.f32 %v628_v26, %v2191_v25 }
 0x10c   : > { %v2195_v35 = vpop.f32.mrf.mxu0 }
 0x10d   : > { %v2197_v36 = vpop.f32.mrf.mxu1  ;;  %630 = vmax.xlane.f32.xlu2 %v629_v32 }
 0x10e   : > { %v632_v37 = vmax.f32 %v2195_v35, %v2197_v36 }
 0x110   : > { %v2201_v39 = vpop.f32.mrf.mxu2 }
 0x111   : > { %v2203_v42 = vpop.f32.mrf.mxu3  ;;  %v633_v43 = vmax.f32 %v632_v37, %v2201_v39  ;;  %v281_v37 = vld [vmem:[#allocation5 + $0x18] sm:$0xff] }
 0x112   : > { %1158 = vmatpush.msrb.mxu0 %v281_v37 }
 0x113   : > { %v634_v49 = vmax.f32 %v633_v43, %v2203_v42  ;;  %v312_v43 = vld [vmem:[#allocation5 + $0x110] sm:$0xff] }
 0x114   : > { %v2207_v50 = vpop.f32.mrf.mxu0  ;;  %1289 = vmatpush.msrb.mxu2 %v312_v43  ;;  %1159 = vmatpush.msrb.mxu0 %v280_v0  ;;  %v326_v0 = vld [vmem:[#allocation5 + $0x180] sm:$0xff] }
 0x115   : > { %v2209_v53 = vpop.f32.mrf.mxu1  ;;  %635 = vmax.xlane.f32.xlu0 %v634_v49 }
 0x116   : > { %v637_v54 = vmax.f32 %v2207_v50, %v2209_v53  ;;  %1160 = vmatpush.msrb.mxu0 %v279_v27 }
 0x118   : > { %v2213_v58 = vpop.f32.mrf.mxu2  ;;  %1161 = vmatpush.msrb.mxu0 %v278_v1 }
 0x119   : > { %v2215_v59 = vpop.f32.mrf.mxu3  ;;  %v638_v60 = vmax.f32 %v637_v54, %v2213_v58  ;;  %v328_v54 = vld [vmem:[#allocation5 + $0x190] sm:$0xff] }
 0x11a   : > { %1354 = vmatpush.msrb.mxu3 %v328_v54 }
 0x11b   : > { %v639_v4 = vmax.f32 %v638_v60, %v2215_v59 }
 0x11c   : > { %v2219_v5 = vpop.f32.mrf.mxu0  ;;  %1355 = vmatpush.msrb.mxu3 %v327_v17 }
 0x11d   : > { %v2221_v6 = vpop.f32.mrf.mxu1  ;;  %640 = vmax.xlane.f32.xlu1 %v639_v4  ;;  %v311_v4 = vld [vmem:[#allocation5 + $0x108] sm:$0xff] }
 0x11e   : > { %v642_v7 = vmax.f32 %v2219_v5, %v2221_v6  ;;  %1290 = vmatpush.msrb.mxu2 %v311_v4  ;;  %1356 = vmatpush.msrb.mxu3 %v326_v0 }
 0x120   : > { %v2225_v11 = vpop.f32.mrf.mxu2 }
 0x121   : > { %v2227_v12 = vpop.f32.mrf.mxu3  ;;  %v643_v15 = vmax.f32 %v642_v7, %v2225_v11 }
 0x123   : > { %v644_v19 = vmax.f32 %v643_v15, %v2227_v12 }
 0x124   : > { %v2231_v22 = vpop.f32.mrf.mxu0 }
 0x125   : > { %v2233_v23 = vpop.f32.mrf.mxu1  ;;  %645 = vmax.xlane.f32.xlu2 %v644_v19 }
 0x126   : > { %v647_v26 = vmax.f32 %v2231_v22, %v2233_v23 }
 0x128   : > { %v2237_v28 = vpop.f32.mrf.mxu2 }
 0x129   : > { %v2239_v31 = vpop.f32.mrf.mxu3  ;;  %v648_v32 = vmax.f32 %v647_v26, %v2237_v28 }
 0x12b   : > { %v649_v46 = vmax.f32 %v648_v32, %v2239_v31  ;;  %v295_v32 = vld [vmem:[#allocation5 + $0x88] sm:$0xff] }
 0x12c   : > { %v2243_v47 = vpop.f32.mrf.mxu0  ;;  %1225 = vmatpush.msrb.mxu1 %v295_v32 }
 0x12d   : > { %v2245_v48 = vpop.f32.mrf.mxu1  ;;  %650 = vmax.xlane.f32.xlu0 %v649_v46 }
 0x12e   : > { %v652_v49 = vmax.f32 %v2243_v47, %v2245_v48 }
 0x130   : > { %v2249_v57 = vpop.f32.mrf.mxu2 }
 0x131   : > { %v2251_v60 = vpop.f32.mrf.mxu3  ;;  %v653_v61 = vmax.f32 %v652_v49, %v2249_v57 }
 0x133   : > { %v654_v7 = vmax.f32 %v653_v61, %v2251_v60  ;;  %v310_v61 = vld [vmem:[#allocation5 + $0x100] sm:$0xff] }
 0x134   : > { %v2255_v8 = vpop.f32.mrf.mxu0  ;;  %1291 = vmatpush.msrb.mxu2 %v310_v61 }
 0x135   : > { %v2257_v15 = vpop.f32.mrf.mxu1  ;;  %655 = vmax.xlane.f32.xlu1 %v654_v7  ;;  %v294_v7 = vld [vmem:[#allocation5 + $0x80] sm:$0xff] }
 0x136   : > { %v657_v16 = vmax.f32 %v2255_v8, %v2257_v15  ;;  %1226 = vmatpush.msrb.mxu1 %v294_v7 }
 0x138   : > { %v2261_v18 = vpop.f32.mrf.mxu2 }
 0x139   : > { %v2263_v19 = vpop.f32.mrf.mxu3  ;;  %v658_v26 = vmax.f32 %v657_v16, %v2261_v18 }
 0x13b   : > { %v659_v37 = vmax.f32 %v658_v26, %v2263_v19 }
 0x13c   : > { %v2267_v38 = vpop.f32.mrf.mxu0 }
 0x13d   : > { %v2269_v43 = vpop.f32.mrf.mxu1  ;;  %660 = vmax.xlane.f32.xlu2 %v659_v37 }
 0x13e   : > { %v662_v46 = vmax.f32 %v2267_v38, %v2269_v43 }
 0x140   : > { %v2273_v49 = vpop.f32.mrf.mxu2 }
 0x141   : > { %2886 = vst [vmem:[#allocation14_spill] sm:$0xff] %v2273_v49  ;;  %v2275_v54 = vpop.f32.mrf.mxu3  ;;  %v663_v4 = vmax.f32 %v662_v46, %v2273_v49 }
 0x142   : > { %2887 = vst [vmem:[#allocation15_spill] sm:$0xff] %v2275_v54 }
 0x143   : > { %v664_v16 = vmax.f32 %v663_v4, %v2275_v54 }
 0x144   : > { %v2279_v17 = vpop.f32.mrf.mxu0 }
 0x145   : > { %2888 = vst [vmem:[#allocation16_spill] sm:$0xff] %v2279_v17  ;;  %v2281_v26 = vpop.f32.mrf.mxu1  ;;  %665 = vmax.xlane.f32.xlu0 %v664_v16 }
 0x146   : > { %2889 = vst [vmem:[#allocation17_spill] sm:$0xff] %v2281_v26  ;;  %v667_v27 = vmax.f32 %v2279_v17, %v2281_v26 }
 0x148   : > { %v2285_v32 = vpop.f32.mrf.mxu2 }
 0x149   : > { %2890 = vst [vmem:[#allocation18_spill] sm:$0xff] %v2285_v32  ;;  %v2287_v37 = vpop.f32.mrf.mxu3  ;;  %v668_v46 = vmax.f32 %v667_v27, %v2285_v32 }
 0x14a   : > { %2891 = vst [vmem:[#allocation19_spill] sm:$0xff] %v2287_v37 }
 0x14b   : > { %v669_v61 = vmax.f32 %v668_v46, %v2287_v37 }
 0x14c   : > { %v2291_v0 = vpop.f32.mrf.mxu0 }
 0x14d   : > { %2892 = vst [vmem:[#allocation20_spill] sm:$0xff] %v2291_v0  ;;  %v2293_v1 = vpop.f32.mrf.mxu1  ;;  %670 = vmax.xlane.f32.xlu1 %v669_v61 }
 0x14e   : > { %2893 = vst [vmem:[#allocation21_spill] sm:$0xff] %v2293_v1  ;;  %v672_v4 = vmax.f32 %v2291_v0, %v2293_v1 }
 0x150   : > { %v2297_v7 = vpop.f32.mrf.mxu2 }
 0x151   : > { %2894 = vst [vmem:[#allocation22_spill] sm:$0xff] %v2297_v7  ;;  %v2299_v16 = vpop.f32.mrf.mxu3  ;;  %v673_v26 = vmax.f32 %v672_v4, %v2297_v7 }
 0x152   : > { %2895 = vst [vmem:[#allocation23_spill] sm:$0xff] %v2299_v16 }
 0x153   : > { %v674_v17 = vmax.f32 %v673_v26, %v2299_v16 }
 0x154   : > { %v2303_v54 = vpop.f32.mrf.mxu0 }
 0x155   : > { %2896 = vst [vmem:[#allocation24_spill] sm:$0xff] %v2303_v54  ;;  %v2305_v27 = vpop.f32.mrf.mxu1  ;;  %675 = vmax.xlane.f32.xlu2 %v674_v17 }
 0x156   : > { %2897 = vst [vmem:[#allocation25_spill] sm:$0xff] %v2305_v27  ;;  %v677_v46 = vmax.f32 %v2303_v54, %v2305_v27 }
 0x158   : > { %v2309_v61 = vpop.f32.mrf.mxu2  ;;  %v606_v37 = vpop.xlane.xlu0 %605 }
 0x159   : > { %v678_v1 = vmax.f32 %v677_v46, %v2309_v61  ;;  %v682_v0 = vsub.f32 %v2123_v29, %v606_v37  ;;  %v683_v32 = vsub.f32 %v2125_v30, %v606_v37  ;;  %v684_v4 = vsub.f32 %v2129_v33, %v606_v37  ;;  %v2315_v26 = vpop.f32.mrf.mxu3 }
 0x15a   : > { %v685_v16 = vsub.f32 %v2131_v34, %v606_v37 }
 0x15b   : > { %v746_v7 = vmul.f32 1.442695, %v682_v0  ;;  %v748_v17 = vmul.f32 1.442695, %v683_v32  ;;  %v750_v49 = vmul.f32 1.442695, %v684_v4  ;;  %v679_v27 = vmax.f32 %v678_v1, %v2315_v26 }
 0x15c   : > { %v752_v54 = vmul.f32 1.442695, %v685_v16 }
 0x15d   : > { %1677 = vpow2.f32 %v746_v7  ;;  %680 = vmax.xlane.f32.xlu0 %v679_v27 }
 0x15e   : > { %1679 = vpow2.f32 %v748_v17 }
 0x15f   : > { %1681 = vpow2.f32 %v750_v49 }
 0x160   : > { %1683 = vpow2.f32 %v752_v54  ;;  %v611_v29 = vpop.xlane.xlu0 %610 }
 0x161   : > { %v686_v30 = vsub.f32 %v2135_v40, %v611_v29  ;;  %v687_v33 = vsub.f32 %v2137_v41, %v611_v29  ;;  %v688_v46 = vsub.f32 %v2141_v44, %v611_v29  ;;  %v689_v34 = vsub.f32 %v2143_v45, %v611_v29 }
 0x163   : > { %v2323_v37 = vpop.eup %1677  ;;  %v754_v32 = vmul.f32 1.442695, %v686_v30  ;;  %v756_v0 = vmul.f32 1.442695, %v687_v33  ;;  %v758_v1 = vmul.f32 1.442695, %v688_v46 }
 0x164   : > { %v2325_v16 = vpop.eup %1679  ;;  %v760_v7 = vmul.f32 1.442695, %v689_v34  ;;  %1162 = vmatmul.f32.vlgmr.msrb.gmra.mxu0 %v2323_v37 }
 0x165   : > { %v2328_v49 = vpop.eup %1681  ;;  %1685 = vpow2.f32 %v754_v32  ;;  %1227 = vmatmul.f32.vlgmr.msrb.gmra.mxu1 %v2325_v16  ;;  %v874_v40 = vadd.f32 %v2325_v16, %v2323_v37 }
 0x166   : > { %v2333_v41 = vpop.eup %1683  ;;  %1687 = vpow2.f32 %v756_v0  ;;  %1292 = vmatmul.f32.vlgmr.msrb.gmra.mxu2 %v2328_v49 }
 0x167   : > { %1689 = vpow2.f32 %v758_v1  ;;  %1357 = vmatmul.f32.vlgmr.msrb.gmra.mxu3 %v2333_v41  ;;  %v875_v44 = vadd.f32 %v2328_v49, %v874_v40 }
 0x168   : > { %1691 = vpow2.f32 %v760_v7  ;;  %v616_v45 = vpop.xlane.xlu1 %615 }
 0x169   : > { %v690_v54 = vsub.f32 %v2147_v51, %v616_v45  ;;  %v691_v27 = vsub.f32 %v2149_v52, %v616_v45  ;;  %v692_v4 = vsub.f32 %v2153_v55, %v616_v45  ;;  %v693_v17 = vsub.f32 %v2155_v56, %v616_v45 }
 0x16a   : > { %v876_v29 = vadd.f32 %v2333_v41, %v875_v44 }
 0x16b   : > { %v2343_v30 = vpop.eup %1685  ;;  %v762_v33 = vmul.f32 1.442695, %v690_v54  ;;  %v764_v46 = vmul.f32 1.442695, %v691_v27  ;;  %v766_v34 = vmul.f32 1.442695, %v692_v4 }
 0x16c   : > { %v2345_v32 = vpop.eup %1687  ;;  %v768_v0 = vmul.f32 1.442695, %v693_v17  ;;  %877 = vadd.xlane.f32.xlu1 %v876_v29  ;;  %1165 = vmatmul.f32.gmra.mxu0 %v2343_v30 }
 0x16d   : > { %v2348_v51 = vpop.eup %1689  ;;  %1693 = vpow2.f32 %v762_v33  ;;  %1230 = vmatmul.f32.gmra.mxu1 %v2345_v32  ;;  %v879_v52 = vadd.f32 %v2345_v32, %v2343_v30 }
 0x16e   : > { %v2353_v55 = vpop.eup %1691  ;;  %1695 = vpow2.f32 %v764_v46  ;;  %1295 = vmatmul.f32.gmra.mxu2 %v2348_v51 }
 0x16f   : > { %1697 = vpow2.f32 %v766_v34  ;;  %1360 = vmatmul.f32.gmra.mxu3 %v2353_v55  ;;  %v880_v56 = vadd.f32 %v2348_v51, %v879_v52 }
 0x170   : > { %1699 = vpow2.f32 %v768_v0  ;;  %v621_v1 = vpop.xlane.xlu1 %620 }
 0x171   : > { %v694_v7 = vsub.f32 %v2159_v62, %v621_v1  ;;  %v695_v40 = vsub.f32 %v2161_v63, %v621_v1  ;;  %v696_v44 = vsub.f32 %v2165_v2, %v621_v1  ;;  %v697_v45 = vsub.f32 %v2167_v3, %v621_v1 }
 0x172   : > { %v881_v54 = vadd.f32 %v2353_v55, %v880_v56 }
 0x173   : > { %v2363_v27 = vpop.eup %1693  ;;  %v770_v4 = vmul.f32 1.442695, %v694_v7  ;;  %v772_v17 = vmul.f32 1.442695, %v695_v40  ;;  %v774_v29 = vmul.f32 1.442695, %v696_v44 }
 0x174   : > { %v2365_v33 = vpop.eup %1695  ;;  %v776_v46 = vmul.f32 1.442695, %v697_v45  ;;  %882 = vadd.xlane.f32.xlu2 %v881_v54  ;;  %1168 = vmatmul.f32.gmra.mxu0 %v2363_v27 }
 0x175   : > { %v2368_v62 = vpop.eup %1697  ;;  %1701 = vpow2.f32 %v770_v4  ;;  %1233 = vmatmul.f32.gmra.mxu1 %v2365_v33  ;;  %v884_v63 = vadd.f32 %v2365_v33, %v2363_v27 }
 0x176   : > { %v2373_v2 = vpop.eup %1699  ;;  %1703 = vpow2.f32 %v772_v17  ;;  %1298 = vmatmul.f32.gmra.mxu2 %v2368_v62 }
 0x177   : > { %1705 = vpow2.f32 %v774_v29  ;;  %1363 = vmatmul.f32.gmra.mxu3 %v2373_v2  ;;  %v885_v3 = vadd.f32 %v2368_v62, %v884_v63 }
 0x178   : > { %1707 = vpow2.f32 %v776_v46  ;;  %v626_v34 = vpop.xlane.xlu2 %625 }
 0x179   : > { %v698_v0 = vsub.f32 %v2171_v9, %v626_v34  ;;  %v699_v52 = vsub.f32 %v2173_v10, %v626_v34  ;;  %v700_v56 = vsub.f32 %v2177_v13, %v626_v34  ;;  %v701_v1 = vsub.f32 %v2179_v14, %v626_v34 }
 0x17a   : > { %v886_v7 = vadd.f32 %v2373_v2, %v885_v3 }
 0x17b   : > { %v2383_v40 = vpop.eup %1701  ;;  %v778_v44 = vmul.f32 1.442695, %v698_v0  ;;  %v780_v45 = vmul.f32 1.442695, %v699_v52  ;;  %v782_v54 = vmul.f32 1.442695, %v700_v56 }
 0x17c   : > { %v2385_v4 = vpop.eup %1703  ;;  %v784_v17 = vmul.f32 1.442695, %v701_v1  ;;  %887 = vadd.xlane.f32.xlu0 %v886_v7  ;;  %1171 = vmatmul.f32.gmra.mxu0 %v2383_v40 }
 0x17d   : > { %v2388_v9 = vpop.eup %1705  ;;  %1709 = vpow2.f32 %v778_v44  ;;  %1236 = vmatmul.f32.gmra.mxu1 %v2385_v4  ;;  %v889_v10 = vadd.f32 %v2385_v4, %v2383_v40 }
 0x17e   : > { %v2393_v13 = vpop.eup %1707  ;;  %1711 = vpow2.f32 %v780_v45  ;;  %1301 = vmatmul.f32.gmra.mxu2 %v2388_v9 }
 0x17f   : > { %1713 = vpow2.f32 %v782_v54  ;;  %1366 = vmatmul.f32.gmra.mxu3 %v2393_v13  ;;  %v890_v14 = vadd.f32 %v2388_v9, %v889_v10 }
 0x180   : > { %1715 = vpow2.f32 %v784_v17  ;;  %v631_v29 = vpop.xlane.xlu2 %630 }
 0x181   : > { %v702_v46 = vsub.f32 %v2183_v20, %v631_v29  ;;  %v703_v63 = vsub.f32 %v2185_v21, %v631_v29  ;;  %v704_v3 = vsub.f32 %v2189_v24, %v631_v29  ;;  %v705_v34 = vsub.f32 %v2191_v25, %v631_v29 }
 0x182   : > { %v891_v0 = vadd.f32 %v2393_v13, %v890_v14 }
 0x183   : > { %v2403_v52 = vpop.eup %1709  ;;  %v786_v56 = vmul.f32 1.442695, %v702_v46  ;;  %v788_v1 = vmul.f32 1.442695, %v703_v63  ;;  %v790_v7 = vmul.f32 1.442695, %v704_v3 }
 0x184   : > { %v2405_v44 = vpop.eup %1711  ;;  %v792_v45 = vmul.f32 1.442695, %v705_v34  ;;  %892 = vadd.xlane.f32.xlu1 %v891_v0  ;;  %1174 = vmatmul.f32.gmra.mxu0 %v2403_v52 }
 0x185   : > { %v2408_v20 = vpop.eup %1713  ;;  %1717 = vpow2.f32 %v786_v56  ;;  %1239 = vmatmul.f32.gmra.mxu1 %v2405_v44  ;;  %v894_v21 = vadd.f32 %v2405_v44, %v2403_v52 }
 0x186   : > { %v2413_v24 = vpop.eup %1715  ;;  %1719 = vpow2.f32 %v788_v1  ;;  %1304 = vmatmul.f32.gmra.mxu2 %v2408_v20 }
 0x187   : > { %1721 = vpow2.f32 %v790_v7  ;;  %1369 = vmatmul.f32.gmra.mxu3 %v2413_v24  ;;  %v895_v25 = vadd.f32 %v2408_v20, %v894_v21 }
 0x188   : > { %1723 = vpow2.f32 %v792_v45  ;;  %v636_v54 = vpop.xlane.xlu0 %635 }
 0x189   : > { %v706_v17 = vsub.f32 %v2195_v35, %v636_v54  ;;  %v707_v10 = vsub.f32 %v2197_v36, %v636_v54  ;;  %v708_v14 = vsub.f32 %v2201_v39, %v636_v54  ;;  %v709_v29 = vsub.f32 %v2203_v42, %v636_v54 }
 0x18a   : > { %v896_v46 = vadd.f32 %v2413_v24, %v895_v25 }
 0x18b   : > { %v2423_v63 = vpop.eup %1717  ;;  %v794_v3 = vmul.f32 1.442695, %v706_v17  ;;  %v796_v34 = vmul.f32 1.442695, %v707_v10  ;;  %v798_v0 = vmul.f32 1.442695, %v708_v14 }
 0x18c   : > { %v2425_v56 = vpop.eup %1719  ;;  %v800_v1 = vmul.f32 1.442695, %v709_v29  ;;  %897 = vadd.xlane.f32.xlu2 %v896_v46  ;;  %1177 = vmatmul.f32.gmra.mxu0 %v2423_v63 }
 0x18d   : > { %v2428_v35 = vpop.eup %1721  ;;  %1725 = vpow2.f32 %v794_v3  ;;  %1242 = vmatmul.f32.gmra.mxu1 %v2425_v56  ;;  %v899_v36 = vadd.f32 %v2425_v56, %v2423_v63 }
 0x18e   : > { %v2433_v39 = vpop.eup %1723  ;;  %1727 = vpow2.f32 %v796_v34  ;;  %1307 = vmatmul.f32.gmra.mxu2 %v2428_v35 }
 0x18f   : > { %1729 = vpow2.f32 %v798_v0  ;;  %1372 = vmatmul.f32.gmra.mxu3 %v2433_v39  ;;  %v900_v42 = vadd.f32 %v2428_v35, %v899_v36 }
 0x190   : > { %1731 = vpow2.f32 %v800_v1  ;;  %v641_v7 = vpop.xlane.xlu1 %640 }
 0x191   : > { %v710_v45 = vsub.f32 %v2207_v50, %v641_v7  ;;  %v711_v21 = vsub.f32 %v2209_v53, %v641_v7  ;;  %v712_v25 = vsub.f32 %v2213_v58, %v641_v7  ;;  %v713_v54 = vsub.f32 %v2215_v59, %v641_v7 }
 0x192   : > { %v901_v17 = vadd.f32 %v2433_v39, %v900_v42 }
 0x193   : > { %v2443_v10 = vpop.eup %1725  ;;  %v802_v14 = vmul.f32 1.442695, %v710_v45  ;;  %v804_v29 = vmul.f32 1.442695, %v711_v21  ;;  %v806_v46 = vmul.f32 1.442695, %v712_v25 }
 0x194   : > { %v2445_v3 = vpop.eup %1727  ;;  %v808_v34 = vmul.f32 1.442695, %v713_v54  ;;  %902 = vadd.xlane.f32.xlu0 %v901_v17  ;;  %1180 = vmatmul.f32.gmra.mxu0 %v2443_v10 }
 0x195   : > { %v2448_v50 = vpop.eup %1729  ;;  %1733 = vpow2.f32 %v802_v14  ;;  %1245 = vmatmul.f32.gmra.mxu1 %v2445_v3  ;;  %v904_v53 = vadd.f32 %v2445_v3, %v2443_v10 }
 0x196   : > { %v2453_v58 = vpop.eup %1731  ;;  %1735 = vpow2.f32 %v804_v29  ;;  %1310 = vmatmul.f32.gmra.mxu2 %v2448_v50 }
 0x197   : > { %1737 = vpow2.f32 %v806_v46  ;;  %1375 = vmatmul.f32.gmra.mxu3 %v2453_v58  ;;  %v905_v59 = vadd.f32 %v2448_v50, %v904_v53 }
 0x198   : > { %1739 = vpow2.f32 %v808_v34  ;;  %v646_v0 = vpop.xlane.xlu2 %645 }
 0x199   : > { %v714_v1 = vsub.f32 %v2219_v5, %v646_v0  ;;  %v715_v36 = vsub.f32 %v2221_v6, %v646_v0  ;;  %v716_v42 = vsub.f32 %v2225_v11, %v646_v0  ;;  %v717_v7 = vsub.f32 %v2227_v12, %v646_v0 }
 0x19a   : > { %v906_v45 = vadd.f32 %v2453_v58, %v905_v59 }
 0x19b   : > { %v2463_v21 = vpop.eup %1733  ;;  %v810_v25 = vmul.f32 1.442695, %v714_v1  ;;  %v812_v54 = vmul.f32 1.442695, %v715_v36  ;;  %v814_v17 = vmul.f32 1.442695, %v716_v42 }
 0x19c   : > { %v2465_v14 = vpop.eup %1735  ;;  %v816_v29 = vmul.f32 1.442695, %v717_v7  ;;  %907 = vadd.xlane.f32.xlu1 %v906_v45  ;;  %1183 = vmatmul.f32.gmra.mxu0 %v2463_v21 }
 0x19d   : > { %v2468_v5 = vpop.eup %1737  ;;  %1741 = vpow2.f32 %v810_v25  ;;  %1248 = vmatmul.f32.gmra.mxu1 %v2465_v14  ;;  %v909_v6 = vadd.f32 %v2465_v14, %v2463_v21 }
 0x19e   : > { %v2473_v11 = vpop.eup %1739  ;;  %1743 = vpow2.f32 %v812_v54  ;;  %1313 = vmatmul.f32.gmra.mxu2 %v2468_v5 }
 0x19f   : > { %1745 = vpow2.f32 %v814_v17  ;;  %1378 = vmatmul.f32.gmra.mxu3 %v2473_v11  ;;  %v910_v12 = vadd.f32 %v2468_v5, %v909_v6 }
 0x1a0   : > { %1747 = vpow2.f32 %v816_v29  ;;  %v651_v46 = vpop.xlane.xlu0 %650 }
 0x1a1   : > { %v718_v34 = vsub.f32 %v2231_v22, %v651_v46  ;;  %v719_v53 = vsub.f32 %v2233_v23, %v651_v46  ;;  %v720_v59 = vsub.f32 %v2237_v28, %v651_v46  ;;  %v721_v0 = vsub.f32 %v2239_v31, %v651_v46 }
 0x1a2   : > { %v911_v1 = vadd.f32 %v2473_v11, %v910_v12 }
 0x1a3   : > { %v2483_v36 = vpop.eup %1741  ;;  %v818_v42 = vmul.f32 1.442695, %v718_v34  ;;  %v820_v7 = vmul.f32 1.442695, %v719_v53  ;;  %v822_v45 = vmul.f32 1.442695, %v720_v59 }
 0x1a4   : > { %v2485_v25 = vpop.eup %1743  ;;  %v824_v54 = vmul.f32 1.442695, %v721_v0  ;;  %912 = vadd.xlane.f32.xlu2 %v911_v1  ;;  %1186 = vmatmul.f32.gmra.mxu0 %v2483_v36 }
 0x1a5   : > { %v2488_v22 = vpop.eup %1745  ;;  %1749 = vpow2.f32 %v818_v42  ;;  %1251 = vmatmul.f32.gmra.mxu1 %v2485_v25  ;;  %v914_v23 = vadd.f32 %v2485_v25, %v2483_v36 }
 0x1a6   : > { %v2493_v28 = vpop.eup %1747  ;;  %1751 = vpow2.f32 %v820_v7  ;;  %1316 = vmatmul.f32.gmra.mxu2 %v2488_v22 }
 0x1a7   : > { %1753 = vpow2.f32 %v822_v45  ;;  %1381 = vmatmul.f32.gmra.mxu3 %v2493_v28  ;;  %v915_v31 = vadd.f32 %v2488_v22, %v914_v23 }
 0x1a8   : > { %1755 = vpow2.f32 %v824_v54  ;;  %v656_v17 = vpop.xlane.xlu1 %655 }
 0x1a9   : > { %v722_v29 = vsub.f32 %v2243_v47, %v656_v17  ;;  %v723_v6 = vsub.f32 %v2245_v48, %v656_v17  ;;  %v724_v12 = vsub.f32 %v2249_v57, %v656_v17  ;;  %v725_v46 = vsub.f32 %v2251_v60, %v656_v17 }
 0x1aa   : > { %v916_v34 = vadd.f32 %v2493_v28, %v915_v31 }
 0x1ab   : > { %v2503_v53 = vpop.eup %1749  ;;  %v826_v59 = vmul.f32 1.442695, %v722_v29  ;;  %v828_v0 = vmul.f32 1.442695, %v723_v6  ;;  %v830_v1 = vmul.f32 1.442695, %v724_v12 }
 0x1ac   : > { %v2505_v42 = vpop.eup %1751  ;;  %v832_v7 = vmul.f32 1.442695, %v725_v46  ;;  %917 = vadd.xlane.f32.xlu0 %v916_v34  ;;  %1189 = vmatmul.f32.gmra.mxu0 %v2503_v53 }
 0x1ad   : > { %v2508_v47 = vpop.eup %1753  ;;  %1757 = vpow2.f32 %v826_v59  ;;  %1254 = vmatmul.f32.gmra.mxu1 %v2505_v42  ;;  %v919_v48 = vadd.f32 %v2505_v42, %v2503_v53 }
 0x1ae   : > { %v2513_v57 = vpop.eup %1755  ;;  %1759 = vpow2.f32 %v828_v0  ;;  %1319 = vmatmul.f32.gmra.mxu2 %v2508_v47 }
 0x1af   : > { %1761 = vpow2.f32 %v830_v1  ;;  %1384 = vmatmul.f32.gmra.mxu3 %v2513_v57  ;;  %v920_v60 = vadd.f32 %v2508_v47, %v919_v48 }
 0x1b0   : > { %1763 = vpow2.f32 %v832_v7  ;;  %v661_v45 = vpop.xlane.xlu2 %660 }
 0x1b1   : > { %v726_v54 = vsub.f32 %v2255_v8, %v661_v45  ;;  %v727_v23 = vsub.f32 %v2257_v15, %v661_v45  ;;  %v728_v31 = vsub.f32 %v2261_v18, %v661_v45  ;;  %v729_v17 = vsub.f32 %v2263_v19, %v661_v45 }
 0x1b2   : > { %v921_v29 = vadd.f32 %v2513_v57, %v920_v60  ;;  %v2900_v60 = vld [vmem:[#allocation14_spill] sm:$0xff] }
 0x1b3   : > { %v2523_v6 = vpop.eup %1757  ;;  %v834_v12 = vmul.f32 1.442695, %v726_v54  ;;  %v836_v46 = vmul.f32 1.442695, %v727_v23  ;;  %v838_v34 = vmul.f32 1.442695, %v728_v31 }
 0x1b4   : > { %v2525_v59 = vpop.eup %1759  ;;  %v840_v0 = vmul.f32 1.442695, %v729_v17  ;;  %922 = vadd.xlane.f32.xlu1 %v921_v29  ;;  %1192 = vmatmul.f32.gmra.mxu0 %v2523_v6  ;;  %v2901_v54 = vld [vmem:[#allocation15_spill] sm:$0xff] }
 0x1b5   : > { %v2528_v8 = vpop.eup %1761  ;;  %1765 = vpow2.f32 %v834_v12  ;;  %1257 = vmatmul.f32.gmra.mxu1 %v2525_v59  ;;  %v924_v15 = vadd.f32 %v2525_v59, %v2523_v6 }
 0x1b6   : > { %2898 = vst [vmem:[#allocation26_spill] sm:$0xff] %v2528_v8  ;;  %v2533_v18 = vpop.eup %1763  ;;  %1767 = vpow2.f32 %v836_v46  ;;  %1322 = vmatmul.f32.gmra.mxu2 %v2528_v8 }
 0x1b7   : > { %2899 = vst [vmem:[#allocation27_spill] sm:$0xff] %v2533_v18  ;;  %1769 = vpow2.f32 %v838_v34  ;;  %1387 = vmatmul.f32.gmra.mxu3 %v2533_v18  ;;  %v925_v19 = vadd.f32 %v2528_v8, %v924_v15 }
 0x1b8   : > { %1771 = vpow2.f32 %v840_v0  ;;  %v666_v1 = vpop.xlane.xlu0 %665 }
 0x1b9   : > { %v730_v7 = vsub.f32 %v2267_v38, %v666_v1  ;;  %v731_v48 = vsub.f32 %v2269_v43, %v666_v1  ;;  %v732_v45 = vsub.f32 %v2900_v60, %v666_v1  ;;  %v733_v23 = vsub.f32 %v2901_v54, %v666_v1  ;;  %v2907_v60 = vld [vmem:[#allocation17_spill] sm:$0xff]  ;;  %v2908_v54 = vld [vmem:[#allocation18_spill] sm:$0xff] }
 0x1ba   : > { %v926_v31 = vadd.f32 %v2533_v18, %v925_v19 }
 0x1bb   : > { %v2543_v17 = vpop.eup %1765  ;;  %v842_v29 = vmul.f32 1.442695, %v730_v7  ;;  %v844_v12 = vmul.f32 1.442695, %v731_v48  ;;  %v846_v46 = vmul.f32 1.442695, %v732_v45 }
 0x1bc   : > { %2902 = vst [vmem:[#allocation14_spill] sm:$0xff] %v2543_v17  ;;  %v2545_v34 = vpop.eup %1767  ;;  %v848_v15 = vmul.f32 1.442695, %v733_v23  ;;  %927 = vadd.xlane.f32.xlu2 %v926_v31  ;;  %1195 = vmatmul.f32.gmra.mxu0 %v2543_v17  ;;  %v2906_v7 = vld [vmem:[#allocation16_spill] sm:$0xff]  ;;  %v2909_v31 = vld [vmem:[#allocation19_spill] sm:$0xff] }
 0x1bd   : > { %2903 = vst [vmem:[#allocation15_spill] sm:$0xff] %v2545_v34  ;;  %v2548_v38 = vpop.eup %1769  ;;  %1773 = vpow2.f32 %v842_v29  ;;  %1260 = vmatmul.f32.gmra.mxu1 %v2545_v34  ;;  %v929_v43 = vadd.f32 %v2545_v34, %v2543_v17 }
 0x1be   : > { %2904 = vst [vmem:[#allocation28_spill] sm:$0xff] %v2548_v38  ;;  %v2553_v0 = vpop.eup %1771  ;;  %1775 = vpow2.f32 %v844_v12  ;;  %1325 = vmatmul.f32.gmra.mxu2 %v2548_v38 }
 0x1bf   : > { %2905 = vst [vmem:[#allocation29_spill] sm:$0xff] %v2553_v0  ;;  %1777 = vpow2.f32 %v846_v46  ;;  %1390 = vmatmul.f32.gmra.mxu3 %v2553_v0  ;;  %v930_v19 = vadd.f32 %v2548_v38, %v929_v43 }
 0x1c0   : > { %1779 = vpow2.f32 %v848_v15  ;;  %v671_v1 = vpop.xlane.xlu1 %670 }
 0x1c1   : > { %v734_v48 = vsub.f32 %v2906_v7, %v671_v1  ;;  %v735_v45 = vsub.f32 %v2907_v60, %v671_v1  ;;  %v736_v23 = vsub.f32 %v2908_v54, %v671_v1  ;;  %v737_v29 = vsub.f32 %v2909_v31, %v671_v1  ;;  %v2914_v54 = vld [vmem:[#allocation22_spill] sm:$0xff]  ;;  %v2915_v31 = vld [vmem:[#allocation23_spill] sm:$0xff] }
 0x1c2   : > { %v931_v34 = vadd.f32 %v2553_v0, %v930_v19 }
 0x1c3   : > { %v2563_v12 = vpop.eup %1773  ;;  %v850_v17 = vmul.f32 1.442695, %v734_v48  ;;  %v852_v46 = vmul.f32 1.442695, %v735_v45  ;;  %v854_v18 = vmul.f32 1.442695, %v736_v23 }
 0x1c4   : > { %2910 = vst [vmem:[#allocation16_spill] sm:$0xff] %v2563_v12  ;;  %v2565_v8 = vpop.eup %1775  ;;  %v856_v43 = vmul.f32 1.442695, %v737_v29  ;;  %932 = vadd.xlane.f32.xlu0 %v931_v34  ;;  %1198 = vmatmul.f32.gmra.mxu0 %v2563_v12  ;;  %v2912_v48 = vld [vmem:[#allocation20_spill] sm:$0xff] }
 0x1c5   : > { %2911 = vst [vmem:[#allocation17_spill] sm:$0xff] %v2565_v8  ;;  %v2568_v15 = vpop.eup %1777  ;;  %1781 = vpow2.f32 %v850_v17  ;;  %1263 = vmatmul.f32.gmra.mxu1 %v2565_v8  ;;  %v934_v1 = vadd.f32 %v2565_v8, %v2563_v12  ;;  %v2913_v17 = vld [vmem:[#allocation21_spill] sm:$0xff] }
 0x1c6   : > { %v2573_v19 = vpop.eup %1779  ;;  %1783 = vpow2.f32 %v852_v46  ;;  %1328 = vmatmul.f32.gmra.mxu2 %v2568_v15 }
 0x1c7   : > { %1785 = vpow2.f32 %v854_v18  ;;  %1393 = vmatmul.f32.gmra.mxu3 %v2573_v19  ;;  %v935_v34 = vadd.f32 %v2568_v15, %v934_v1 }
 0x1c8   : > { %1787 = vpow2.f32 %v856_v43  ;;  %v676_v7 = vpop.xlane.xlu2 %675 }
 0x1c9   : > { %v738_v60 = vsub.f32 %v2912_v48, %v676_v7  ;;  %v739_v45 = vsub.f32 %v2913_v17, %v676_v7  ;;  %v740_v23 = vsub.f32 %v2914_v54, %v676_v7  ;;  %v741_v29 = vsub.f32 %v2915_v31, %v676_v7 }
 0x1ca   : > { %v936_v8 = vadd.f32 %v2573_v19, %v935_v34 }
 0x1cb   : > { %v2583_v46 = vpop.eup %1781  ;;  %v858_v12 = vmul.f32 1.442695, %v738_v60  ;;  %v860_v18 = vmul.f32 1.442695, %v739_v45  ;;  %v862_v0 = vmul.f32 1.442695, %v740_v23 }
 0x1cc   : > { %2916 = vst [vmem:[#allocation18_spill] sm:$0xff] %v2583_v46  ;;  %v2585_v38 = vpop.eup %1783  ;;  %v864_v1 = vmul.f32 1.442695, %v741_v29  ;;  %937 = vadd.xlane.f32.xlu1 %v936_v8  ;;  %1201 = vmatmul.f32.gmra.mxu0 %v2583_v46  ;;  %v2918_v60 = vld [vmem:[#allocation24_spill] sm:$0xff] }
 0x1cd   : > { %2917 = vst [vmem:[#allocation19_spill] sm:$0xff] %v2585_v38  ;;  %v2588_v43 = vpop.eup %1785  ;;  %1789 = vpow2.f32 %v858_v12  ;;  %1266 = vmatmul.f32.gmra.mxu1 %v2585_v38  ;;  %v939_v7 = vadd.f32 %v2585_v38, %v2583_v46  ;;  %v2919_v12 = vld [vmem:[#allocation25_spill] sm:$0xff] }
 0x1ce   : > { %v2593_v34 = vpop.eup %1787  ;;  %1791 = vpow2.f32 %v860_v18  ;;  %1331 = vmatmul.f32.gmra.mxu2 %v2588_v43 }
 0x1cf   : > { %1793 = vpow2.f32 %v862_v0  ;;  %1396 = vmatmul.f32.gmra.mxu3 %v2593_v34  ;;  %v940_v8 = vadd.f32 %v2588_v43, %v939_v7 }
 0x1d0   : > { %1795 = vpow2.f32 %v864_v1  ;;  %v681_v48 = vpop.xlane.xlu0 %680 }
 0x1d1   : > { %v742_v17 = vsub.f32 %v2918_v60, %v681_v48  ;;  %v743_v45 = vsub.f32 %v2919_v12, %v681_v48  ;;  %v744_v54 = vsub.f32 %v2309_v61, %v681_v48  ;;  %v745_v23 = vsub.f32 %v2315_v26, %v681_v48 }
 0x1d2   : > { %v941_v31 = vadd.f32 %v2593_v34, %v940_v8 }
 0x1d3   : > { %v2603_v29 = vpop.eup %1789  ;;  %v866_v18 = vmul.f32 1.442695, %v742_v17  ;;  %v868_v0 = vmul.f32 1.442695, %v743_v45  ;;  %v870_v38 = vmul.f32 1.442695, %v744_v54 }
 0x1d4   : > { %2920 = vst [vmem:[#allocation20_spill] sm:$0xff] %v2603_v29  ;;  %v2605_v46 = vpop.eup %1791  ;;  %v872_v7 = vmul.f32 1.442695, %v745_v23  ;;  %942 = vadd.xlane.f32.xlu2 %v941_v31  ;;  %1204 = vmatmul.f32.gmra.mxu0 %v2603_v29 }
 0x1d5   : > { %2921 = vst [vmem:[#allocation21_spill] sm:$0xff] %v2605_v46  ;;  %v2608_v1 = vpop.eup %1793  ;;  %1797 = vpow2.f32 %v866_v18  ;;  %1269 = vmatmul.f32.gmra.mxu1 %v2605_v46  ;;  %v944_v61 = vadd.f32 %v2605_v46, %v2603_v29 }
 0x1d6   : > { %2922 = vst [vmem:[#allocation22_spill] sm:$0xff] %v2608_v1  ;;  %v2613_v26 = vpop.eup %1795  ;;  %1799 = vpow2.f32 %v868_v0  ;;  %1334 = vmatmul.f32.gmra.mxu2 %v2608_v1 }
 0x1d7   : > { %2923 = vst [vmem:[#allocation23_spill] sm:$0xff] %v2613_v26  ;;  %1801 = vpow2.f32 %v870_v38  ;;  %1399 = vmatmul.f32.gmra.mxu3 %v2613_v26  ;;  %v945_v8 = vadd.f32 %v2608_v1, %v944_v61 }
 0x1d8   : > { %1803 = vpow2.f32 %v872_v7 }
 0x1d9   : > { %v946_v48 = vadd.f32 %v2613_v26, %v945_v8 }
 0x1db   : > { %v2619_v60 = vpop.eup %1797  ;;  %947 = vadd.xlane.f32.xlu0 %v946_v48 }
 0x1dc   : > { %2924 = vst [vmem:[#allocation24_spill] sm:$0xff] %v2619_v60  ;;  %v2621_v17 = vpop.eup %1799  ;;  %1207 = vmatmul.f32.gmra.mxu0 %v2619_v60 }
 0x1dd   : > { %2925 = vst [vmem:[#allocation25_spill] sm:$0xff] %v2621_v17  ;;  %v2624_v12 = vpop.eup %1801  ;;  %1272 = vmatmul.f32.gmra.mxu1 %v2621_v17  ;;  %v949_v38 = vadd.f32 %v2621_v17, %v2619_v60 }
 0x1de   : > { %2926 = vst [vmem:[#allocation30_spill] sm:$0xff] %v2624_v12  ;;  %v2629_v45 = vpop.eup %1803  ;;  %1337 = vmatmul.f32.gmra.mxu2 %v2624_v12 }
 0x1df   : > { %2927 = vst [vmem:[#allocation31_spill] sm:$0xff] %v2629_v45  ;;  %1402 = vmatmul.f32.gmra.mxu3 %v2629_v45  ;;  %v878_v54 = vpop.xlane.xlu1 %877  ;;  %v950_v23 = vadd.f32 %v2624_v12, %v949_v38 }
 0x1e0   : > { %1805 = vrcp.f32 %v878_v54 }
 0x1e1   : > { %v1163_v31 = vpop.f32.mrf.mxu0  ;;  %v951_v18 = vadd.f32 %v2629_v45, %v950_v23 }
 0x1e2   : > { %v1228_v0 = vpop.f32.mrf.mxu1 }
 0x1e3   : > { %952 = vadd.xlane.f32.xlu1 %v951_v18  ;;  %v1229_v48 = vadd.f32 %v1228_v0, %v1163_v31 }
 0x1e6   : > { %v1806_v7 = vpop.eup %1805 }
 0x1e7   : > { %v970_v61 = vmul.f32 %v1806_v7, %v878_v54  ;;  %v883_v8 = vpop.xlane.xlu2 %882 }
 0x1e8   : > { %1807 = vrcp.f32 %v883_v8 }
 0x1e9   : > { %v986_v17 = vsub.f32 2.0, %v970_v61  ;;  %v1293_v60 = vpop.f32.mrf.mxu2  ;;  %v1166_v26 = vpop.f32.mrf.mxu0 }
 0x1ea   : > { %v1294_v38 = vadd.f32 %v1293_v60, %v1229_v48  ;;  %v1358_v12 = vpop.f32.mrf.mxu3  ;;  %v1231_v1 = vpop.f32.mrf.mxu1 }
 0x1eb   : > { %v1002_v46 = vmul.f32 %v1806_v7, %v986_v17 }
 0x1ec   : > { %v1359_v23 = vadd.f32 %v1358_v12, %v1294_v38 }
 0x1ed   : > { %v1018_v18 = vmul.f32 %v2323_v37, %v1002_v46  ;;  %v1019_v45 = vmul.f32 %v2325_v16, %v1002_v46  ;;  %v1020_v29 = vmul.f32 %v2328_v49, %v1002_v46  ;;  %v1021_v31 = vmul.f32 %v2333_v41, %v1002_v46 }
 0x1ee   : > { %v1808_v54 = vpop.eup %1807  ;;  %v1406_v17 = vmul.f32 %v1359_v23, %v1002_v46  ;;  %v1232_v37 = vadd.f32 %v1231_v1, %v1166_v26 }
 0x1ef   : > { %1082 = vst [vmem:[%s2644_s24] sm:$0xff] %v1018_v18  ;;  %v971_v60 = vmul.f32 %v1808_v54, %v883_v8  ;;  %v888_v12 = vpop.xlane.xlu0 %887 }
 0x1f0   : > { %1083 = vst [vmem:[%s2644_s24 + $0x8] sm:$0xff] %v1019_v45  ;;  %1809 = vrcp.f32 %v888_v12 }
 0x1f1   : > { %1084 = vst [vmem:[%s2644_s24 + $0x10] sm:$0xff] %v1020_v29  ;;  %v987_v16 = vsub.f32 2.0, %v971_v60  ;;  %v1296_v49 = vpop.f32.mrf.mxu2  ;;  %v1169_v0 = vpop.f32.mrf.mxu0 }
 0x1f2   : > { %1085 = vst [vmem:[%s2644_s24 + $0x18] sm:$0xff] %v1021_v31  ;;  %v1297_v41 = vadd.f32 %v1296_v49, %v1232_v37  ;;  %v1361_v7 = vpop.f32.mrf.mxu3  ;;  %v1234_v61 = vpop.f32.mrf.mxu1 }
 0x1f3   : > { %v1003_v48 = vmul.f32 %v1808_v54, %v987_v16  ;;  %1422 = vst [vmem:[%s2650_s25] sm:$0xff] %v1406_v17  ;;  %v1235_v54 = vadd.f32 %v1234_v61, %v1169_v0 }
 0x1f4   : > { %v1362_v46 = vadd.f32 %v1361_v7, %v1297_v41 }
 0x1f5   : > { %v1022_v1 = vmul.f32 %v2343_v30, %v1003_v48  ;;  %v1023_v29 = vmul.f32 %v2345_v32, %v1003_v48  ;;  %v1024_v26 = vmul.f32 %v2348_v51, %v1003_v48  ;;  %v1025_v8 = vmul.f32 %v2353_v55, %v1003_v48 }
 0x1f6   : > { %v1810_v45 = vpop.eup %1809  ;;  %v1407_v23 = vmul.f32 %v1362_v46, %v1003_v48 }
 0x1f7   : > { %1086 = vst [vmem:[%s2644_s24 + $0x20] sm:$0xff] %v1022_v1  ;;  %v972_v38 = vmul.f32 %v1810_v45, %v888_v12  ;;  %v893_v18 = vpop.xlane.xlu1 %892 }
 0x1f8   : > { %1087 = vst [vmem:[%s2644_s24 + $0x28] sm:$0xff] %v1023_v29  ;;  %1811 = vrcp.f32 %v893_v18 }
 0x1f9   : > { %1088 = vst [vmem:[%s2644_s24 + $0x30] sm:$0xff] %v1024_v26  ;;  %v988_v31 = vsub.f32 2.0, %v972_v38  ;;  %v1299_v30 = vpop.f32.mrf.mxu2  ;;  %v1172_v60 = vpop.f32.mrf.mxu0 }
 0x1fa   : > { %1089 = vst [vmem:[%s2644_s24 + $0x38] sm:$0xff] %v1025_v8  ;;  %v1300_v32 = vadd.f32 %v1299_v30, %v1235_v54  ;;  %v1364_v51 = vpop.f32.mrf.mxu3  ;;  %v1237_v17 = vpop.f32.mrf.mxu1 }
 0x1fb   : > { %v1004_v55 = vmul.f32 %v1810_v45, %v988_v31  ;;  %1423 = vst [vmem:[%s2650_s25 + $0x8] sm:$0xff] %v1407_v23  ;;  %v1238_v46 = vadd.f32 %v1237_v17, %v1172_v60 }
 0x1fc   : > { %v1365_v37 = vadd.f32 %v1364_v51, %v1300_v32 }
 0x1fd   : > { %v1026_v12 = vmul.f32 %v2363_v27, %v1004_v55  ;;  %v1027_v16 = vmul.f32 %v2365_v33, %v1004_v55  ;;  %v1028_v49 = vmul.f32 %v2368_v62, %v1004_v55  ;;  %v1029_v41 = vmul.f32 %v2373_v2, %v1004_v55 }
 0x1fe   : > { %v1812_v0 = vpop.eup %1811  ;;  %v1408_v61 = vmul.f32 %v1365_v37, %v1004_v55 }
 0x1ff   : > { %1090 = vst [vmem:[%s2644_s24 + $0x40] sm:$0xff] %v1026_v12  ;;  %v973_v7 = vmul.f32 %v1812_v0, %v893_v18  ;;  %v898_v48 = vpop.xlane.xlu2 %897 }
 0x200   : > { %1091 = vst [vmem:[%s2644_s24 + $0x48] sm:$0xff] %v1027_v16  ;;  %1813 = vrcp.f32 %v898_v48 }
 0x201   : > { %1092 = vst [vmem:[%s2644_s24 + $0x50] sm:$0xff] %v1028_v49  ;;  %v989_v1 = vsub.f32 2.0, %v973_v7  ;;  %v1302_v27 = vpop.f32.mrf.mxu2  ;;  %v1175_v29 = vpop.f32.mrf.mxu0 }
 0x202   : > { %1093 = vst [vmem:[%s2644_s24 + $0x58] sm:$0xff] %v1029_v41  ;;  %v1303_v33 = vadd.f32 %v1302_v27, %v1238_v46  ;;  %v1367_v62 = vpop.f32.mrf.mxu3  ;;  %v1240_v26 = vpop.f32.mrf.mxu1 }
 0x203   : > { %v1005_v2 = vmul.f32 %v1812_v0, %v989_v1  ;;  %1424 = vst [vmem:[%s2650_s25 + $0x10] sm:$0xff] %v1408_v61  ;;  %v1241_v32 = vadd.f32 %v1240_v26, %v1175_v29 }
 0x204   : > { %v1368_v45 = vadd.f32 %v1367_v62, %v1303_v33 }
 0x205   : > { %v1030_v8 = vmul.f32 %v2383_v40, %v1005_v2  ;;  %v1031_v38 = vmul.f32 %v2385_v4, %v1005_v2  ;;  %v1032_v23 = vmul.f32 %v2388_v9, %v1005_v2  ;;  %v1033_v54 = vmul.f32 %v2393_v13, %v1005_v2 }
 0x206   : > { %v1814_v18 = vpop.eup %1813  ;;  %v1409_v30 = vmul.f32 %v1368_v45, %v1005_v2 }
 0x207   : > { %1094 = vst [vmem:[%s2644_s24 + $0x60] sm:$0xff] %v1030_v8  ;;  %v974_v31 = vmul.f32 %v1814_v18, %v898_v48  ;;  %v903_v60 = vpop.xlane.xlu0 %902 }
 0x208   : > { %1095 = vst [vmem:[%s2644_s24 + $0x68] sm:$0xff] %v1031_v38  ;;  %1815 = vrcp.f32 %v903_v60 }
 0x209   : > { %1096 = vst [vmem:[%s2644_s24 + $0x70] sm:$0xff] %v1032_v23  ;;  %v990_v51 = vsub.f32 2.0, %v974_v31  ;;  %v1305_v40 = vpop.f32.mrf.mxu2  ;;  %v1178_v17 = vpop.f32.mrf.mxu0 }
 0x20a   : > { %1097 = vst [vmem:[%s2644_s24 + $0x78] sm:$0xff] %v1033_v54  ;;  %v1306_v4 = vadd.f32 %v1305_v40, %v1241_v32  ;;  %v1370_v9 = vpop.f32.mrf.mxu3  ;;  %v1243_v55 = vpop.f32.mrf.mxu1 }
 0x20b   : > { %v1006_v13 = vmul.f32 %v1814_v18, %v990_v51  ;;  %1425 = vst [vmem:[%s2650_s25 + $0x18] sm:$0xff] %v1409_v30  ;;  %v1244_v46 = vadd.f32 %v1243_v55, %v1178_v17 }
 0x20c   : > { %v1371_v37 = vadd.f32 %v1370_v9, %v1306_v4 }
 0x20d   : > { %v1034_v12 = vmul.f32 %v2403_v52, %v1006_v13  ;;  %v1035_v16 = vmul.f32 %v2405_v44, %v1006_v13  ;;  %v1036_v49 = vmul.f32 %v2408_v20, %v1006_v13  ;;  %v1037_v41 = vmul.f32 %v2413_v24, %v1006_v13 }
 0x20e   : > { %v1816_v0 = vpop.eup %1815  ;;  %v1410_v61 = vmul.f32 %v1371_v37, %v1006_v13 }
 0x20f   : > { %1098 = vst [vmem:[%s2644_s24 + $0x80] sm:$0xff] %v1034_v12  ;;  %v975_v7 = vmul.f32 %v1816_v0, %v903_v60  ;;  %v908_v48 = vpop.xlane.xlu1 %907 }
 0x210   : > { %1099 = vst [vmem:[%s2644_s24 + $0x88] sm:$0xff] %v1035_v16  ;;  %1817 = vrcp.f32 %v908_v48 }
 0x211   : > { %1100 = vst [vmem:[%s2644_s24 + $0x90] sm:$0xff] %v1036_v49  ;;  %v991_v1 = vsub.f32 2.0, %v975_v7  ;;  %v1308_v52 = vpop.f32.mrf.mxu2  ;;  %v1181_v27 = vpop.f32.mrf.mxu0 }
 0x212   : > { %1101 = vst [vmem:[%s2644_s24 + $0x98] sm:$0xff] %v1037_v41  ;;  %v1309_v44 = vadd.f32 %v1308_v52, %v1244_v46  ;;  %v1373_v20 = vpop.f32.mrf.mxu3  ;;  %v1246_v29 = vpop.f32.mrf.mxu1 }
 0x213   : > { %v1007_v24 = vmul.f32 %v1816_v0, %v991_v1  ;;  %1426 = vst [vmem:[%s2650_s25 + $0x20] sm:$0xff] %v1410_v61  ;;  %v1247_v54 = vadd.f32 %v1246_v29, %v1181_v27 }
 0x214   : > { %v1374_v33 = vadd.f32 %v1373_v20, %v1309_v44 }
 0x215   : > { %v1038_v62 = vmul.f32 %v2423_v63, %v1007_v24  ;;  %v1039_v26 = vmul.f32 %v2425_v56, %v1007_v24  ;;  %v1040_v2 = vmul.f32 %v2428_v35, %v1007_v24  ;;  %v1041_v8 = vmul.f32 %v2433_v39, %v1007_v24 }
 0x216   : > { %v1818_v45 = vpop.eup %1817  ;;  %v1411_v23 = vmul.f32 %v1374_v33, %v1007_v24 }
 0x217   : > { %1102 = vst [vmem:[%s2644_s24 + $0xa0] sm:$0xff] %v1038_v62  ;;  %v976_v38 = vmul.f32 %v1818_v45, %v908_v48  ;;  %v913_v18 = vpop.xlane.xlu2 %912 }
 0x218   : > { %1103 = vst [vmem:[%s2644_s24 + $0xa8] sm:$0xff] %v1039_v26  ;;  %1819 = vrcp.f32 %v913_v18 }
 0x219   : > { %1104 = vst [vmem:[%s2644_s24 + $0xb0] sm:$0xff] %v1040_v2  ;;  %v992_v31 = vsub.f32 2.0, %v976_v38  ;;  %v1311_v63 = vpop.f32.mrf.mxu2  ;;  %v1184_v30 = vpop.f32.mrf.mxu0 }
 0x21a   : > { %1105 = vst [vmem:[%s2644_s24 + $0xb8] sm:$0xff] %v1041_v8  ;;  %v1312_v56 = vadd.f32 %v1311_v63, %v1247_v54  ;;  %v1376_v35 = vpop.f32.mrf.mxu3  ;;  %v1249_v60 = vpop.f32.mrf.mxu1 }
 0x21b   : > { %v1008_v39 = vmul.f32 %v1818_v45, %v992_v31  ;;  %1427 = vst [vmem:[%s2650_s25 + $0x28] sm:$0xff] %v1411_v23  ;;  %v1250_v12 = vadd.f32 %v1249_v60, %v1184_v30 }
 0x21c   : > { %v1377_v32 = vadd.f32 %v1376_v35, %v1312_v56 }
 0x21d   : > { %v1042_v51 = vmul.f32 %v2443_v10, %v1008_v39  ;;  %v1043_v40 = vmul.f32 %v2445_v3, %v1008_v39  ;;  %v1044_v17 = vmul.f32 %v2448_v50, %v1008_v39  ;;  %v1045_v9 = vmul.f32 %v2453_v58, %v1008_v39 }
 0x21e   : > { %v1820_v4 = vpop.eup %1819  ;;  %v1412_v13 = vmul.f32 %v1377_v32, %v1008_v39 }
 0x21f   : > { %1106 = vst [vmem:[%s2644_s24 + $0xc0] sm:$0xff] %v1042_v51  ;;  %v977_v55 = vmul.f32 %v1820_v4, %v913_v18  ;;  %v918_v37 = vpop.xlane.xlu0 %917 }
 0x220   : > { %1107 = vst [vmem:[%s2644_s24 + $0xc8] sm:$0xff] %v1043_v40  ;;  %1821 = vrcp.f32 %v918_v37 }
 0x221   : > { %1108 = vst [vmem:[%s2644_s24 + $0xd0] sm:$0xff] %v1044_v17  ;;  %v993_v16 = vsub.f32 2.0, %v977_v55  ;;  %v1314_v10 = vpop.f32.mrf.mxu2  ;;  %v1187_v49 = vpop.f32.mrf.mxu0 }
 0x222   : > { %1109 = vst [vmem:[%s2644_s24 + $0xd8] sm:$0xff] %v1045_v9  ;;  %v1315_v3 = vadd.f32 %v1314_v10, %v1250_v12  ;;  %v1379_v50 = vpop.f32.mrf.mxu3  ;;  %v1252_v0 = vpop.f32.mrf.mxu1 }
 0x223   : > { %v1009_v58 = vmul.f32 %v1820_v4, %v993_v16  ;;  %1428 = vst [vmem:[%s2650_s25 + $0x30] sm:$0xff] %v1412_v13  ;;  %v1253_v20 = vadd.f32 %v1252_v0, %v1187_v49 }
 0x224   : > { %v1380_v41 = vadd.f32 %v1379_v50, %v1315_v3  ;;  %v2928_v3 = vld [vmem:[#allocation26_spill] sm:$0xff] }
 0x225   : > { %v1046_v7 = vmul.f32 %v2463_v21, %v1009_v58  ;;  %v1047_v61 = vmul.f32 %v2465_v14, %v1009_v58  ;;  %v1048_v48 = vmul.f32 %v2468_v5, %v1009_v58  ;;  %v1049_v1 = vmul.f32 %v2473_v11, %v1009_v58 }
 0x226   : > { %v1822_v46 = vpop.eup %1821  ;;  %v1413_v27 = vmul.f32 %v1380_v41, %v1009_v58  ;;  %v2929_v58 = vld [vmem:[#allocation27_spill] sm:$0xff] }
 0x227   : > { %1110 = vst [vmem:[%s2644_s24 + $0xe0] sm:$0xff] %v1046_v7  ;;  %v978_v52 = vmul.f32 %v1822_v46, %v918_v37  ;;  %v923_v44 = vpop.xlane.xlu1 %922 }
 0x228   : > { %1111 = vst [vmem:[%s2644_s24 + $0xe8] sm:$0xff] %v1047_v61  ;;  %1823 = vrcp.f32 %v923_v44 }
 0x229   : > { %1112 = vst [vmem:[%s2644_s24 + $0xf0] sm:$0xff] %v1048_v48  ;;  %v994_v29 = vsub.f32 2.0, %v978_v52  ;;  %v1317_v21 = vpop.f32.mrf.mxu2  ;;  %v1190_v24 = vpop.f32.mrf.mxu0 }
 0x22a   : > { %1113 = vst [vmem:[%s2644_s24 + $0xf8] sm:$0xff] %v1049_v1  ;;  %v1318_v14 = vadd.f32 %v1317_v21, %v1253_v20  ;;  %v1382_v5 = vpop.f32.mrf.mxu3  ;;  %v1255_v33 = vpop.f32.mrf.mxu1  ;;  %v2930_v21 = vld [vmem:[#allocation14_spill] sm:$0xff] }
 0x22b   : > { %v1010_v11 = vmul.f32 %v1822_v46, %v994_v29  ;;  %1429 = vst [vmem:[%s2650_s25 + $0x38] sm:$0xff] %v1413_v27  ;;  %v1256_v31 = vadd.f32 %v1255_v33, %v1190_v24  ;;  %v2932_v33 = vld [vmem:[#allocation28_spill] sm:$0xff] }
 0x22c   : > { %v1383_v62 = vadd.f32 %v1382_v5, %v1318_v14  ;;  %v2931_v14 = vld [vmem:[#allocation15_spill] sm:$0xff] }
 0x22d   : > { %v1050_v26 = vmul.f32 %v2483_v36, %v1010_v11  ;;  %v1051_v2 = vmul.f32 %v2485_v25, %v1010_v11  ;;  %v1052_v45 = vmul.f32 %v2488_v22, %v1010_v11  ;;  %v1053_v38 = vmul.f32 %v2493_v28, %v1010_v11 }
 0x22e   : > { %v1824_v8 = vpop.eup %1823  ;;  %v1414_v18 = vmul.f32 %v1383_v62, %v1010_v11 }
 0x22f   : > { %1114 = vst [vmem:[%s2644_s24 + $0x100] sm:$0xff] %v1050_v26  ;;  %v979_v23 = vmul.f32 %v1824_v8, %v923_v44  ;;  %v928_v54 = vpop.xlane.xlu2 %927  ;;  %v2933_v26 = vld [vmem:[#allocation29_spill] sm:$0xff] }
 0x230   : > { %1115 = vst [vmem:[%s2644_s24 + $0x108] sm:$0xff] %v1051_v2  ;;  %1825 = vrcp.f32 %v928_v54 }
 0x231   : > { %1116 = vst [vmem:[%s2644_s24 + $0x110] sm:$0xff] %v1052_v45  ;;  %v995_v63 = vsub.f32 2.0, %v979_v23  ;;  %v1320_v36 = vpop.f32.mrf.mxu2  ;;  %v1193_v30 = vpop.f32.mrf.mxu0 }
 0x232   : > { %1117 = vst [vmem:[%s2644_s24 + $0x118] sm:$0xff] %v1053_v38  ;;  %v1321_v25 = vadd.f32 %v1320_v36, %v1256_v31  ;;  %v1385_v22 = vpop.f32.mrf.mxu3  ;;  %v1258_v56 = vpop.f32.mrf.mxu1 }
 0x233   : > { %v1011_v28 = vmul.f32 %v1824_v8, %v995_v63  ;;  %1430 = vst [vmem:[%s2650_s25 + $0x40] sm:$0xff] %v1414_v18  ;;  %v1259_v55 = vadd.f32 %v1258_v56, %v1193_v30  ;;  %v2934_v56 = vld [vmem:[#allocation16_spill] sm:$0xff] }
 0x234   : > { %v1386_v35 = vadd.f32 %v1385_v22, %v1321_v25 }
 0x235   : > { %v1054_v60 = vmul.f32 %v2503_v53, %v1011_v28  ;;  %v1055_v39 = vmul.f32 %v2505_v42, %v1011_v28  ;;  %v1056_v32 = vmul.f32 %v2508_v47, %v1011_v28  ;;  %v1057_v40 = vmul.f32 %v2513_v57, %v1011_v28 }
 0x236   : > { %v1826_v51 = vpop.eup %1825  ;;  %v1415_v4 = vmul.f32 %v1386_v35, %v1011_v28  ;;  %v2935_v35 = vld [vmem:[#allocation17_spill] sm:$0xff] }
 0x237   : > { %1118 = vst [vmem:[%s2644_s24 + $0x120] sm:$0xff] %v1054_v60  ;;  %v980_v17 = vmul.f32 %v1826_v51, %v928_v54  ;;  %v933_v9 = vpop.xlane.xlu0 %932 }
 0x238   : > { %1119 = vst [vmem:[%s2644_s24 + $0x128] sm:$0xff] %v1055_v39  ;;  %1827 = vrcp.f32 %v933_v9 }
 0x239   : > { %1120 = vst [vmem:[%s2644_s24 + $0x130] sm:$0xff] %v1056_v32  ;;  %v996_v13 = vsub.f32 2.0, %v980_v17  ;;  %v1323_v53 = vpop.f32.mrf.mxu2  ;;  %v1196_v37 = vpop.f32.mrf.mxu0 }
 0x23a   : > { %1121 = vst [vmem:[%s2644_s24 + $0x138] sm:$0xff] %v1057_v40  ;;  %v1324_v42 = vadd.f32 %v1323_v53, %v1259_v55  ;;  %v1388_v47 = vpop.f32.mrf.mxu3  ;;  %v1261_v12 = vpop.f32.mrf.mxu1 }
 0x23b   : > { %v1012_v57 = vmul.f32 %v1826_v51, %v996_v13  ;;  %1431 = vst [vmem:[%s2650_s25 + $0x48] sm:$0xff] %v1415_v4  ;;  %v1262_v46 = vadd.f32 %v1261_v12, %v1196_v37 }
 0x23c   : > { %v1389_v16 = vadd.f32 %v1388_v47, %v1324_v42 }
 0x23d   : > { %v1058_v10 = vmul.f32 %v2523_v6, %v1012_v57  ;;  %v1059_v49 = vmul.f32 %v2525_v59, %v1012_v57  ;;  %v1060_v50 = vmul.f32 %v2928_v3, %v1012_v57  ;;  %v1061_v41 = vmul.f32 %v2929_v58, %v1012_v57 }
 0x23e   : > { %v1828_v0 = vpop.eup %1827  ;;  %v1416_v61 = vmul.f32 %v1389_v16, %v1012_v57  ;;  %v2936_v57 = vld [vmem:[#allocation18_spill] sm:$0xff] }
 0x23f   : > { %1122 = vst [vmem:[%s2644_s24 + $0x140] sm:$0xff] %v1058_v10  ;;  %v981_v7 = vmul.f32 %v1828_v0, %v933_v9  ;;  %v938_v48 = vpop.xlane.xlu1 %937  ;;  %v2937_v10 = vld [vmem:[#allocation19_spill] sm:$0xff] }
 0x240   : > { %1123 = vst [vmem:[%s2644_s24 + $0x148] sm:$0xff] %v1059_v49  ;;  %1829 = vrcp.f32 %v938_v48 }
 0x241   : > { %1124 = vst [vmem:[%s2644_s24 + $0x150] sm:$0xff] %v1060_v50  ;;  %v997_v1 = vsub.f32 2.0, %v981_v7  ;;  %v1326_v6 = vpop.f32.mrf.mxu2  ;;  %v1199_v52 = vpop.f32.mrf.mxu0 }
 0x242   : > { %1125 = vst [vmem:[%s2644_s24 + $0x158] sm:$0xff] %v1061_v41  ;;  %v1327_v59 = vadd.f32 %v1326_v6, %v1262_v46  ;;  %v1391_v27 = vpop.f32.mrf.mxu3  ;;  %v1264_v44 = vpop.f32.mrf.mxu1 }
 0x243   : > { %v1013_v20 = vmul.f32 %v1828_v0, %v997_v1  ;;  %1432 = vst [vmem:[%s2650_s25 + $0x50] sm:$0xff] %v1416_v61  ;;  %v1265_v23 = vadd.f32 %v1264_v44, %v1199_v52  ;;  %v2939_v52 = vld [vmem:[#allocation21_spill] sm:$0xff] }
 0x244   : > { %v1392_v29 = vadd.f32 %v1391_v27, %v1327_v59  ;;  %v2940_v27 = vld [vmem:[#allocation22_spill] sm:$0xff] }
 0x245   : > { %v1062_v24 = vmul.f32 %v2930_v21, %v1013_v20  ;;  %v1063_v5 = vmul.f32 %v2931_v14, %v1013_v20  ;;  %v1064_v11 = vmul.f32 %v2932_v33, %v1013_v20  ;;  %v1065_v2 = vmul.f32 %v2933_v26, %v1013_v20 }
 0x246   : > { %v1830_v62 = vpop.eup %1829  ;;  %v1417_v8 = vmul.f32 %v1392_v29, %v1013_v20  ;;  %v2941_v29 = vld [vmem:[#allocation23_spill] sm:$0xff] }
 0x247   : > { %1126 = vst [vmem:[%s2644_s24 + $0x160] sm:$0xff] %v1062_v24  ;;  %v982_v45 = vmul.f32 %v1830_v62, %v938_v48  ;;  %v943_v38 = vpop.xlane.xlu2 %942 }
 0x248   : > { %1127 = vst [vmem:[%s2644_s24 + $0x168] sm:$0xff] %v1063_v5  ;;  %1831 = vrcp.f32 %v943_v38 }
 0x249   : > { %1128 = vst [vmem:[%s2644_s24 + $0x170] sm:$0xff] %v1064_v11  ;;  %v998_v18 = vsub.f32 2.0, %v982_v45  ;;  %v1329_v54 = vpop.f32.mrf.mxu2  ;;  %v1202_v31 = vpop.f32.mrf.mxu0 }
 0x24a   : > { %1129 = vst [vmem:[%s2644_s24 + $0x178] sm:$0xff] %v1065_v2  ;;  %v1330_v63 = vadd.f32 %v1329_v54, %v1265_v23  ;;  %v1394_v36 = vpop.f32.mrf.mxu3  ;;  %v1267_v30 = vpop.f32.mrf.mxu1 }
 0x24b   : > { %v1014_v25 = vmul.f32 %v1830_v62, %v998_v18  ;;  %1433 = vst [vmem:[%s2650_s25 + $0x58] sm:$0xff] %v1417_v8  ;;  %v1268_v9 = vadd.f32 %v1267_v30, %v1202_v31  ;;  %v2943_v18 = vld [vmem:[#allocation25_spill] sm:$0xff]  ;;  %v2944_v31 = vld [vmem:[#allocation30_spill] sm:$0xff]  ;;  %v2945_v30 = vld [vmem:[#allocation31_spill] sm:$0xff] }
 0x24c   : > { %v1395_v22 = vadd.f32 %v1394_v36, %v1330_v63 }
 0x24d   : > { %v1066_v28 = vmul.f32 %v2934_v56, %v1014_v25  ;;  %v1067_v60 = vmul.f32 %v2935_v35, %v1014_v25  ;;  %v1068_v39 = vmul.f32 %v2568_v15, %v1014_v25  ;;  %v1069_v51 = vmul.f32 %v2573_v19, %v1014_v25 }
 0x24e   : > { %v1832_v32 = vpop.eup %1831  ;;  %v948_v40 = vpop.xlane.xlu0 %947  ;;  %v1418_v4 = vmul.f32 %v1395_v22, %v1014_v25 }
 0x24f   : > { %1130 = vst [vmem:[%s2644_s24 + $0x180] sm:$0xff] %v1066_v28  ;;  %v983_v17 = vmul.f32 %v1832_v32, %v943_v38  ;;  %1833 = vrcp.f32 %v948_v40  ;;  %v2942_v38 = vld [vmem:[#allocation24_spill] sm:$0xff] }
 0x250   : > { %1131 = vst [vmem:[%s2644_s24 + $0x188] sm:$0xff] %v1067_v60 }
 0x251   : > { %1132 = vst [vmem:[%s2644_s24 + $0x190] sm:$0xff] %v1068_v39  ;;  %v999_v55 = vsub.f32 2.0, %v983_v17  ;;  %v1332_v13 = vpop.f32.mrf.mxu2  ;;  %v1205_v42 = vpop.f32.mrf.mxu0 }
 0x252   : > { %1133 = vst [vmem:[%s2644_s24 + $0x198] sm:$0xff] %v1069_v51  ;;  %v1333_v53 = vadd.f32 %v1332_v13, %v1268_v9  ;;  %v1397_v37 = vpop.f32.mrf.mxu3  ;;  %v1270_v19 = vpop.f32.mrf.mxu1 }
 0x253   : > { %v1015_v15 = vmul.f32 %v1832_v32, %v999_v55  ;;  %1434 = vst [vmem:[%s2650_s25 + $0x60] sm:$0xff] %v1418_v4  ;;  %v1271_v61 = vadd.f32 %v1270_v19, %v1205_v42 }
 0x254   : > { %v1398_v47 = vadd.f32 %v1397_v37, %v1333_v53 }
 0x255   : > { %v1834_v12 = vpop.eup %1833  ;;  %v1070_v16 = vmul.f32 %v2936_v57, %v1015_v15  ;;  %v1071_v49 = vmul.f32 %v2937_v10, %v1015_v15  ;;  %v1072_v3 = vmul.f32 %v2588_v43, %v1015_v15  ;;  %v1073_v50 = vmul.f32 %v2593_v34, %v1015_v15  ;;  %v2938_v34 = vld [vmem:[#allocation20_spill] sm:$0xff] }
 0x256   : > { %v984_v0 = vmul.f32 %v1834_v12, %v948_v40  ;;  %v953_v58 = vpop.xlane.xlu1 %952  ;;  %v1419_v41 = vmul.f32 %v1398_v47, %v1015_v15 }
 0x257   : > { %1134 = vst [vmem:[%s2644_s24 + $0x1a0] sm:$0xff] %v1070_v16  ;;  %1835 = vrcp.f32 %v953_v58 }
 0x258   : > { %1135 = vst [vmem:[%s2644_s24 + $0x1a8] sm:$0xff] %v1071_v49  ;;  %v1000_v7 = vsub.f32 2.0, %v984_v0 }
 0x259   : > { %1136 = vst [vmem:[%s2644_s24 + $0x1b0] sm:$0xff] %v1072_v3  ;;  %v1335_v48 = vpop.f32.mrf.mxu2  ;;  %v1208_v14 = vpop.f32.mrf.mxu0 }
 0x25a   : > { %1137 = vst [vmem:[%s2644_s24 + $0x1b8] sm:$0xff] %v1073_v50  ;;  %v1016_v46 = vmul.f32 %v1834_v12, %v1000_v7  ;;  %v1336_v1 = vadd.f32 %v1335_v48, %v1271_v61  ;;  %v1400_v43 = vpop.f32.mrf.mxu3  ;;  %v1273_v5 = vpop.f32.mrf.mxu1 }
 0x25b   : > { %1435 = vst [vmem:[%s2650_s25 + $0x68] sm:$0xff] %v1419_v41  ;;  %v1274_v26 = vadd.f32 %v1273_v5, %v1208_v14 }
 0x25c   : > { %v1074_v6 = vmul.f32 %v2938_v34, %v1016_v46  ;;  %v1075_v59 = vmul.f32 %v2939_v52, %v1016_v46  ;;  %v1076_v44 = vmul.f32 %v2940_v27, %v1016_v46  ;;  %v1077_v21 = vmul.f32 %v2941_v29, %v1016_v46 }
 0x25d   : > { %v1836_v20 = vpop.eup %1835  ;;  %v1401_v24 = vadd.f32 %v1400_v43, %v1336_v1 }
 0x25e   : > { %1138 = vst [vmem:[%s2644_s24 + $0x1c0] sm:$0xff] %v1074_v6  ;;  %v985_v33 = vmul.f32 %v1836_v20, %v953_v58 }
 0x25f   : > { %1139 = vst [vmem:[%s2644_s24 + $0x1c8] sm:$0xff] %v1075_v59  ;;  %v1420_v11 = vmul.f32 %v1401_v24, %v1016_v46 }
 0x260   : > { %1140 = vst [vmem:[%s2644_s24 + $0x1d0] sm:$0xff] %v1076_v44  ;;  %v1001_v62 = vsub.f32 2.0, %v985_v33 }
 0x261   : > { %1141 = vst [vmem:[%s2644_s24 + $0x1d8] sm:$0xff] %v1077_v21  ;;  %v1338_v2 = vpop.f32.mrf.mxu2 }
 0x262   : > { %v1017_v45 = vmul.f32 %v1836_v20, %v1001_v62  ;;  %1436 = vst [vmem:[%s2650_s25 + $0x70] sm:$0xff] %v1420_v11  ;;  %v1339_v8 = vadd.f32 %v1338_v2, %v1274_v26  ;;  %v1403_v36 = vpop.f32.mrf.mxu3 }
 0x264   : > { %v1078_v23 = vmul.f32 %v2942_v38, %v1017_v45  ;;  %v1079_v54 = vmul.f32 %v2943_v18, %v1017_v45  ;;  %v1080_v63 = vmul.f32 %v2944_v31, %v1017_v45  ;;  %v1081_v25 = vmul.f32 %v2945_v30, %v1017_v45 }
 0x265   : > { %v1404_v22 = vadd.f32 %v1403_v36, %v1339_v8 }
 0x266   : > { %1142 = vst [vmem:[%s2644_s24 + $0x1e0] sm:$0xff] %v1078_v23 }
 0x267   : > { %1143 = vst [vmem:[%s2644_s24 + $0x1e8] sm:$0xff] %v1079_v54  ;;  %v1421_v56 = vmul.f32 %v1404_v22, %v1017_v45 }
 0x268   : > { %1144 = vst [vmem:[%s2644_s24 + $0x1f0] sm:$0xff] %v1080_v63 }
 0x269   : > { %1145 = vst [vmem:[%s2644_s24 + $0x1f8] sm:$0xff] %v1081_v25 }
 0x26a   : > { %1437 = vst [vmem:[%s2650_s25 + $0x78] sm:$0xff] %v1421_v56 }
 0x26b   : > { %1924 = shalt.err (!%p1921_p7)
}
 0x26c   : > { %s2005_s24 = smov 128   ;;  %s2006_s25 = smov 8  }
 0x26d   : > { %1614 = dma.vmem_to_hbm [thread:$0]  (%p2067_p5), %s1457_s16, 2048, %s2788_s30, %s1439_s9, %s2005_s24, %s2005_s24, %s2006_s25  }
 0x26e   : > { %s1444_s29 = scalar_lea.sflag [#allocation9], %s2636_s17  ;;  %s1939_s4 = sshra.s32 %s2801_s8, 4  ;;  %s1940_s4 = int_to_ptr.hbm [resolvable:$true] %s1939_s4 }
 0x26f   : > { %s1941_s5 = scalar_lea.hbm %s1940_s4, 512  ;;  %s1945_s11 = scalar_lea.hbm %s2852_s3, 2048 }
 0x270   : > { %p1942_p8 = scmp.ne.s32.totalorder %s1940_s4, %s1941_s5  ;;  %p1946_p11 = scmp.lt.s32.totalorder %s1940_s4, %s2852_s3 }
 0x271   : > { %p1947_p12 = scmp.lt.s32.totalorder %s1945_s11, %s1941_s5 }
 0x272   : > { %p1943_p9 = pnand %p1942_p8, %p2067_p5 }
 0x273   : > { %p1948_p13 = por %p1947_p12, %p1946_p11 }
 0x274   : > { %p1944_p10 = pneg %p1943_p9 }
 0x276   : > { %p1949_p0 = pnand %p1948_p13, %p1944_p10 }
 0x278   : > { %1952 = shalt.err (!%p1949_p0)
}
 0x279   : > { %s2007_s17 = smov 512   ;;  %s2008_s30 = smov 32  }
 0x27a   : > { %1615 = dma.vmem_to_hbm [thread:$0]  (%p2067_p5), %s2799_s7, 8192, %s2801_s8, %s1444_s29, %s2007_s17, %s2007_s17, %s2008_s30  }
 0x27b PF: > { %p1636_p1 = scmp.ge.s32.totalorder %s1999_s15, 2  ;;  %s1491_s16 = sand.u32 1, %s1987_s12  }
 0x27c   : > { %s1492_s9 = scalar_lea.sflag [#allocation4], %s1491_s16 }
 0x27d   : > { %p1626_p2 = pnand %p1636_p1, %p2071_p6 }
 0x27f   : > { %p1627_p3 = pneg %p1626_p2 }
 0x281   : > { %1978 = dma.done.wait (%p1627_p3), %s1492_s9, 2048  }
 0x282   : > { %1980 = vsyncadd (%p1627_p3), %s1492_s9, 4294965248  ;;  %s1502_s26 = scalar_lea.sflag [#allocation9], %s1491_s16 }
 0x283   : > { %1982 = dma.done.wait (%p1627_p3), %s1502_s26, 8192  }
 0x284   : > { %1984 = vsyncadd (%p1627_p3), %s1502_s26, 4294959104  ;;  %p19_p5 = scmp.ge.s32.totalorder %s2054_s18, 6   ;;  %s2946_s12 = smov %s1991_s13 }
 0x285   : > { %s2947_s13 = smov %s1995_s14  ;;  %s2948_s14 = smov %s2065_s21 }
 0x286   : > { %s2949_s15 = smov %s2054_s18  ;;  %21 = sbr.rel (!%p19_p5) target bundleno = 7 (0x7), region = 87 }
 0x28b   :  { %1508 = vsyncpa [#allocation3], 1 }
 0x28c   :  { %1510 = vsyncpa [#allocation3 + $0x1], 1 }
 0x28d   :  { %1511 = vsyncpa [#allocation6], 1 }
 0x28e   :  { %1512 = vsyncpa [#allocation4], 1 }
 0x28f   :  { %1514 = vsyncpa [#allocation4 + $0x1], 1 }
 0x290   :  { %1515 = vsyncpa [#allocation9], 1 }
 0x291   :  { %1517 = vsyncpa [#allocation9 + $0x1], 1 }

</bundles_post_ra>
